<compile_context>
chip_gen: v5e
topology: v5e:2x2
jax: 0.10.0
libtpu: 0.0.40
codegen_flags: <defaults>
</compile_context>

<pallas_src>
import functools

import jax
import jax.numpy as jnp
import numpy as np
from jax import lax
from jax.experimental import pallas as pl
from jax.experimental.pallas import tpu as pltpu

# ----------------------------- configuration ------------------------------
B, C, HEAD = 2, 32, 4
HEAD_DIM = C // HEAD
N, M = 16, 16            # points in desc1 / desc2 (both < 2500 -> dense branch)
BN_EPS = 1e-5


# ------------------------------ Pallas kernel ------------------------------
def _attn_prop_kernel(
    x1_ref, x2_ref, res_ref, mask_ref,
    wq_ref, bq_ref, wkv_ref, bkv_ref,
    w1a_ref, w1b_ref, bn_scale_ref, bn_shift_ref,
    w2_ref, b2_ref,
    res_lam_ref,                      # SMEM, shape [head]
    out_ref,
    *, head, head_dim, hpad, exp_bf16,
):
    x1 = x1_ref[0]        # [c, tn]   channels-first, f32
    x2 = x2_ref[0]        # [c, m]    f32
    res = res_ref[0]      # [tn, m]   bf16
    mask = mask_ref[0]    # [tn, m]   bf16

    # 1x1 conv projections, channels-first: W[c_out, c_in] @ x[c_in, n].
    # Wrapper has already: folded 1/sqrt(d) into wq/bq, padded each head's
    # rows to `hpad`, and fused the softmax-denominator "ones" row into the
    # value projection (zero weights, bias 1).
    q = jnp.dot(wq_ref[...], x1, preferred_element_type=jnp.float32) + bq_ref[...]     # [head*hpad, tn]
    kv = jnp.dot(wkv_ref[...], x2, preferred_element_type=jnp.float32) + bkv_ref[...]  # [2*head*hpad, m]

    # Single full-array bf16 cast each (hoisted out of the head loop); all
    # per-head slices below are aligned 16-row sublane packs.
    qb = q.astype(jnp.bfloat16)
    kvb = kv.astype(jnp.bfloat16)

    dn_qk = (((0,), (0,)), ((), ()))   # contract the (padded) head_dim axis
    dn_m = (((1,), (1,)), ((), ()))    # contract the key (m, lane) axis

    head_outs = []
    for h in range(head):
        lo = h * hpad
        qh = qb[lo:lo + hpad, :]                                   # [hpad, tn]
        kh = kvb[lo:lo + hpad, :]                                  # [hpad, m]
        vsh = kvb[head * hpad + lo:head * hpad + lo + hpad, :]     # [hpad, m]: v rows | ones | 0-pad

        simi = lax.dot_general(qh, kh, dn_qk,
                               preferred_element_type=jnp.float32)             # [tn, m]
        # upper clamp only: exp underflow to 0 on the low side is exact, and
        # the +30 cap keeps mask * exp finite (matches PyTorch semantics).
        simi = jnp.minimum(simi + res_lam_ref[h] * res, 30.0)
        if exp_bf16:
            # bf16 EUP/VPU path (v6e / v7x): exp and mask-mul packed in bf16.
            seb = jnp.exp(simi.astype(jnp.bfloat16)) * mask                    # bf16
        else:
            # v5e and older: f32 exp, fused expression, immediate bf16 cast.
            seb = (jnp.exp(simi) * mask).astype(jnp.bfloat16)

        # Fused PV + denominator matmul: rows 0..d-1 -> acc, row d -> sum(se).
        acc_den = lax.dot_general(vsh, seb, dn_m,
                                  preferred_element_type=jnp.float32)          # [hpad, tn]
        acc = acc_den[:head_dim, :]                                            # [d, tn]
        den = acc_den[head_dim:head_dim + 1, :]                                # [1, tn]
        inv = pl.reciprocal(den + 1e-8, approx=True)
        head_outs.append(acc * inv)

    add_value = jnp.concatenate(head_outs, axis=0)        # [c, tn], sublane-aligned

    # cat_filter with mh_filter folded into its first conv:
    #   conv(2c->2c, no bias) -> folded BN -> ReLU -> conv(2c->c)
    h1 = (jnp.dot(w1a_ref[...], x1, preferred_element_type=jnp.float32)
          + jnp.dot(w1b_ref[...], add_value, preferred_element_type=jnp.float32))  # [2c, tn]
    h1 = h1 * bn_scale_ref[...] + bn_shift_ref[...]
    h1 = jnp.maximum(h1, 0.0)
    h2 = jnp.dot(w2_ref[...], h1, preferred_element_type=jnp.float32) + b2_ref[...]

    out_ref[0] = x1 + h2


# ------------------------------ host helpers -------------------------------
def _pad_head_rows(w, b, head, d, hpad):
    """Zero-pad each head's output rows of a [head*d, c_in] 1x1-conv to hpad."""
    c_in = w.shape[1]
    w = jnp.pad(w.reshape(head, d, c_in), ((0, 0), (0, hpad - d), (0, 0)))
    b = jnp.pad(b.reshape(head, d), ((0, 0), (0, hpad - d)))
    return w.reshape(head * hpad, c_in), b.reshape(head * hpad)


def _chip_defaults():
    """(exp_in_bf16, big-n query tile, scoped VMEM limit) per TPU generation."""
    try:
        kind = jax.devices()[0].device_kind.lower()
    except Exception:
        kind = ""
    old_gen = any(t in kind for t in ("v2", "v3", "v4", "v5"))   # no bf16 VPU/EUP
    if "v7" in kind:
        # 64 MiB physical VMEM per TC -> smaller query tile, modest scoped limit.
        return True, 256, 48 * 2**20
    if old_gen:
        return False, 512, 96 * 2**20
    return True, 512, 96 * 2**20


# ------------------------------ host wrapper -------------------------------
def attention_propagation(desc1, desc2, neighb, neigh_mask, res_attention, params,
                          *, head=HEAD, q_tile=None):
    """desc1: [b,c,n], desc2: [b,c,m], neigh_mask/res_attention: [b,n,m]."""
    del neighb  # unused in the dense (n, m < 2500) branch
    b, c, n = desc1.shape
    m = desc2.shape[2]
    head_dim = c // head
    assert head * head_dim == c
    hpad = ((head_dim + 1 + 15) // 16) * 16     # per-head row pad (bf16 sublane pack)

    exp_bf16, big_tile, vmem_limit = _chip_defaults()

    # Channels-first all the way through; the two dominant [n, m] HBM streams
    # are loaded as bf16 (half the f32 traffic).
    x1 = desc1.astype(jnp.float32)
    x2 = desc2.astype(jnp.float32)
    res = res_attention.astype(jnp.bfloat16)
    mask = neigh_mask.astype(jnp.bfloat16)

    # ---- trace-time glue: folds and fusions ----
    inv_sqrt_d = 1.0 / float(head_dim) ** 0.5
    wq, bq = _pad_head_rows(params["wq"] * inv_sqrt_d, params["bq"] * inv_sqrt_d,
                            head, head_dim, hpad)
    wk, bk = _pad_head_rows(params["wk"], params["bk"], head, head_dim, hpad)
    wv, bv = _pad_head_rows(params["wv"], params["bv"], head, head_dim, hpad)
    # Softmax denominator as an extra "ones" output row of the value projection.
    bv = bv.at[jnp.arange(head) * hpad + head_dim].set(1.0)
    wkv = jnp.concatenate([wk, wv], axis=0)                    # [2*head*hpad, c]
    bkv = jnp.concatenate([bk, bv], axis=0).reshape(-1, 1)
    bq = bq.reshape(-1, 1)

    # Fold mh_filter into cat_filter's first conv and the folded-BN shift.
    w1a = params["w1"][:, :c]                                  # applies to desc1
    w1b = params["w1"][:, c:]                                  # applies to mh output
    w1b_f = jnp.dot(w1b, params["wmh"])                        # [2c, c] applies to add_value
    scale = params["bn_gamma"] / jnp.sqrt(params["bn_var"] + BN_EPS)
    shift = (params["bn_beta"] - params["bn_mean"] * scale
             + scale * jnp.dot(w1b, params["bmh"]))            # fold bmh through BN
    bn_scale = scale.reshape(2 * c, 1)
    bn_shift = shift.reshape(2 * c, 1)
    w2 = params["w2"]
    b2 = params["b2"].reshape(c, 1)
    res_lam = params["res_lam"].reshape(-1)

    # Query tiling (full key dim per tile, so no online softmax is needed).
    if q_tile is None:
        q_tile = n if n <= big_tile else big_tile
    tn = int(q_tile)
    n_pad = ((n + tn - 1) // tn) * tn
    if n_pad != n:   # production n (e.g. 2500) need not divide the tile: pad + slice
        x1 = jnp.pad(x1, ((0, 0), (0, 0), (0, n_pad - n)))
        res = jnp.pad(res, ((0, 0), (0, n_pad - n), (0, 0)))
        mask = jnp.pad(mask, ((0, 0), (0, n_pad - n), (0, 0)))
    grid = (b, n_pad // tn)

    hq = head * hpad
    in_specs = [
        pl.BlockSpec((1, c, tn), lambda ib, it: (ib, 0, it)),       # x1
        pl.BlockSpec((1, c, m), lambda ib, it: (ib, 0, 0)),         # x2
        pl.BlockSpec((1, tn, m), lambda ib, it: (ib, it, 0)),       # res_attention (bf16)
        pl.BlockSpec((1, tn, m), lambda ib, it: (ib, it, 0)),       # neigh_mask (bf16)
        pl.BlockSpec((hq, c), lambda ib, it: (0, 0)),               # wq (scaled, padded)
        pl.BlockSpec((hq, 1), lambda ib, it: (0, 0)),               # bq
        pl.BlockSpec((2 * hq, c), lambda ib, it: (0, 0)),           # wkv (k | v+ones, fused)
        pl.BlockSpec((2 * hq, 1), lambda ib, it: (0, 0)),           # bkv
        pl.BlockSpec((2 * c, c), lambda ib, it: (0, 0)),            # w1a
        pl.BlockSpec((2 * c, c), lambda ib, it: (0, 0)),            # w1b @ wmh
        pl.BlockSpec((2 * c, 1), lambda ib, it: (0, 0)),            # bn scale
        pl.BlockSpec((2 * c, 1), lambda ib, it: (0, 0)),            # bn shift (+ folded bmh)
        pl.BlockSpec((c, 2 * c), lambda ib, it: (0, 0)),            # w2
        pl.BlockSpec((c, 1), lambda ib, it: (0, 0)),                # b2
        pl.BlockSpec(memory_space=pltpu.MemorySpace.SMEM),          # res_lam [head]
    ]

    kernel = functools.partial(_attn_prop_kernel, head=head, head_dim=head_dim,
                               hpad=hpad, exp_bf16=exp_bf16)

    out = pl.pallas_call(
        kernel,
        out_shape=jax.ShapeDtypeStruct((b, c, n_pad), jnp.float32),
        grid=grid,
        in_specs=in_specs,
        out_specs=pl.BlockSpec((1, c, tn), lambda ib, it: (ib, 0, it)),
        compiler_params=pltpu.CompilerParams(
            dimension_semantics=("parallel", "parallel"),
            vmem_limit_bytes=int(vmem_limit)),
    )(
        x1, x2, res, mask,
        wq, bq, wkv, bkv,
        w1a, w1b_f, bn_scale, bn_shift, w2, b2,
        res_lam,
    )
    return out[:, :, :n]   # already [b, c, n] channels-first


# --------------------------- pure-JAX reference ----------------------------
def reference(desc1, desc2, neigh_mask, res_attention, params):
    b, c, n = desc1.shape
    m = desc2.shape[2]
    head, head_dim = HEAD, c // HEAD

    def conv1x1(x, w, bias):  # x: [b,c_in,n], w: [c_out,c_in], bias: [c_out]
        return jnp.einsum("oi,bin->bon", w, x) + bias.reshape(1, -1, 1)

    q = conv1x1(desc1, params["wq"], params["bq"]).reshape(b, head, head_dim, n)
    k = conv1x1(desc2, params["wk"], params["bk"]).reshape(b, head, head_dim, m)
    v = conv1x1(desc2, params["wv"], params["bv"]).reshape(b, head, head_dim, m)

    simi = (jnp.einsum("bhdn,bhdm->bhnm", q, k) / (head_dim ** 0.5)
            + params["res_lam"].reshape(1, head, 1, 1) * res_attention[:, None])
    se = jnp.exp(jnp.clip(simi, -30.0, 30.0)) * neigh_mask[:, None]
    score = se / (jnp.sum(se, axis=-1, keepdims=True) + 1e-8)
    add_value = jnp.einsum("bhnm,bhdm->bhdn", score, v).reshape(b, c, n)

    av = conv1x1(add_value, params["wmh"], params["bmh"])
    cat = jnp.concatenate([desc1, av], axis=1)                   # [b, 2c, n]
    h1 = jnp.einsum("oi,bin->bon", params["w1"], cat)
    scale = params["bn_gamma"] / jnp.sqrt(params["bn_var"] + BN_EPS)
    shift = params["bn_beta"] - params["bn_mean"] * scale
    h1 = h1 * scale.reshape(1, -1, 1) + shift.reshape(1, -1, 1)
    h1 = jnp.maximum(h1, 0.0)
    h2 = jnp.einsum("oi,bin->bon", params["w2"], h1) + params["b2"].reshape(1, -1, 1)
    return desc1 + h2


# ---------------------------------- main -----------------------------------
if __name__ == "__main__":
    key = jax.random.PRNGKey(0)
    ks = jax.random.split(key, 24)

    def w(k, shape, s=0.1):
        return jax.random.normal(k, shape, jnp.float32) * s

    # Conv1d weights kept in PyTorch orientation: W[c_out, c_in].
    params = {
        "wq": w(ks[0], (C, C)),  "bq": w(ks[1], (C,)),
        "wk": w(ks[2], (C, C)),  "bk": w(ks[3], (C,)),
        "wv": w(ks[4], (C, C)),  "bv": w(ks[5], (C,)),
        "wmh": w(ks[6], (C, C)), "bmh": w(ks[7], (C,)),
        "w1": w(ks[8], (2 * C, 2 * C)),
        "w2": w(ks[9], (C, 2 * C)), "b2": w(ks[10], (C,)),
        "res_lam": jnp.ones((HEAD,), jnp.float32),               # nn.Parameter(ones)
        # eval-mode BN with (perturbed) running stats to exercise the folding
        "bn_gamma": 1.0 + 0.1 * jax.random.normal(ks[15], (2 * C,), jnp.float32),
        "bn_beta": 0.1 * jax.random.normal(ks[16], (2 * C,), jnp.float32),
        "bn_mean": 0.1 * jax.random.normal(ks[17], (2 * C,), jnp.float32),
        "bn_var": 1.0 + 0.1 * jax.random.uniform(ks[18], (2 * C,), jnp.float32),
    }

    desc1 = jax.random.normal(ks[11], (B, C, N), jnp.float32)
    desc2 = jax.random.normal(ks[12], (B, C, M), jnp.float32)
    neigh_mask = (jax.random.uniform(ks[13], (B, N, M)) > 0.3).astype(jnp.float32)
    res_attention = jax.random.normal(ks[14], (B, N, M), jnp.float32) * 0.1
    neighb = jnp.zeros((B, 4, N), jnp.int32)   # unused in the dense branch

    out = attention_propagation(desc1, desc2, neighb, neigh_mask,
                                res_attention, params)
    out = jax.block_until_ready(out)

    ref = reference(desc1, desc2, neigh_mask, res_attention, params)
    np.testing.assert_allclose(np.asarray(out), np.asarray(ref),
                               rtol=5e-2, atol=5e-2)

    # TODO(synk): the gather-based sparse branch (n or m >= 2500 in eval) is not
    # implemented; only the dense branch of the reference forward is covered.
    print("KERNEL_OK")
</pallas_src>

<mosaic_0001>
module attributes {stable_mosaic.version = 11 : i64} {
  func.func @_attn_prop_kernel(%arg0: i32, %arg1: i32, %arg2: memref<1x32x16xf32, #tpu.memory_space<vmem>>, %arg3: memref<1x32x16xf32, #tpu.memory_space<vmem>>, %arg4: memref<1x16x16xbf16, #tpu.memory_space<vmem>>, %arg5: memref<1x16x16xbf16, #tpu.memory_space<vmem>>, %arg6: memref<64x32xf32, #tpu.memory_space<vmem>>, %arg7: memref<64x1xf32, #tpu.memory_space<vmem>>, %arg8: memref<128x32xf32, #tpu.memory_space<vmem>>, %arg9: memref<128x1xf32, #tpu.memory_space<vmem>>, %arg10: memref<64x32xf32, #tpu.memory_space<vmem>>, %arg11: memref<64x32xf32, #tpu.memory_space<vmem>>, %arg12: memref<64x1xf32, #tpu.memory_space<vmem>>, %arg13: memref<64x1xf32, #tpu.memory_space<vmem>>, %arg14: memref<32x64xf32, #tpu.memory_space<vmem>>, %arg15: memref<32x1xf32, #tpu.memory_space<vmem>>, %arg16: memref<4xf32, #tpu.memory_space<smem>>, %arg17: memref<1x32x16xf32, #tpu.memory_space<vmem>>) attributes {dimension_semantics = [#tpu.dimension_semantics<parallel>, #tpu.dimension_semantics<parallel>], iteration_bounds = array<i64: 2, 1>, scalar_prefetch = 0 : i64, scratch_operands = 0 : i64, tpu.core_type = #tpu.core_type<tc>, window_params = [{transform_indices = @transform_0, window_bounds = array<i64: 1, 32, 16>}, {transform_indices = @transform_1, window_bounds = array<i64: 1, 32, 16>}, {transform_indices = @transform_2, window_bounds = array<i64: 1, 16, 16>}, {transform_indices = @transform_3, window_bounds = array<i64: 1, 16, 16>}, {pipeline_mode = #tpu.pipeline_mode<synchronous>, transform_indices = @transform_4, window_bounds = array<i64: 64, 32>}, {pipeline_mode = #tpu.pipeline_mode<synchronous>, transform_indices = @transform_5, window_bounds = array<i64: 64, 1>}, {pipeline_mode = #tpu.pipeline_mode<synchronous>, transform_indices = @transform_6, window_bounds = array<i64: 128, 32>}, {pipeline_mode = #tpu.pipeline_mode<synchronous>, transform_indices = @transform_7, window_bounds = array<i64: 128, 1>}, {pipeline_mode = #tpu.pipeline_mode<synchronous>, transform_indices = @transform_8, window_bounds = array<i64: 64, 32>}, {pipeline_mode = #tpu.pipeline_mode<synchronous>, transform_indices = @transform_9, window_bounds = array<i64: 64, 32>}, {pipeline_mode = #tpu.pipeline_mode<synchronous>, transform_indices = @transform_10, window_bounds = array<i64: 64, 1>}, {pipeline_mode = #tpu.pipeline_mode<synchronous>, transform_indices = @transform_11, window_bounds = array<i64: 64, 1>}, {pipeline_mode = #tpu.pipeline_mode<synchronous>, transform_indices = @transform_12, window_bounds = array<i64: 32, 64>}, {pipeline_mode = #tpu.pipeline_mode<synchronous>, transform_indices = @transform_13, window_bounds = array<i64: 32, 1>}, {transform_indices = @transform_14, window_bounds = array<i64: 4>}, {transform_indices = @transform_15, window_bounds = array<i64: 1, 32, 16>}]} {
    %c0 = arith.constant 0 : index
    %c0_0 = arith.constant 0 : index
    %c0_1 = arith.constant 0 : index
    %0 = vector.load %arg2[%c0, %c0_0, %c0_1] : memref<1x32x16xf32, #tpu.memory_space<vmem>>, vector<1x32x16xf32>
    %1 = vector.shape_cast %0 : vector<1x32x16xf32> to vector<32x16xf32>
    %c0_2 = arith.constant 0 : index
    %c0_3 = arith.constant 0 : index
    %c0_4 = arith.constant 0 : index
    %2 = vector.load %arg3[%c0_2, %c0_3, %c0_4] : memref<1x32x16xf32, #tpu.memory_space<vmem>>, vector<1x32x16xf32>
    %3 = vector.shape_cast %2 : vector<1x32x16xf32> to vector<32x16xf32>
    %c0_5 = arith.constant 0 : index
    %c0_6 = arith.constant 0 : index
    %c0_7 = arith.constant 0 : index
    %4 = vector.load %arg4[%c0_5, %c0_6, %c0_7] : memref<1x16x16xbf16, #tpu.memory_space<vmem>>, vector<1x16x16xbf16>
    %5 = vector.shape_cast %4 : vector<1x16x16xbf16> to vector<16x16xbf16>
    %c0_8 = arith.constant 0 : index
    %c0_9 = arith.constant 0 : index
    %c0_10 = arith.constant 0 : index
    %6 = vector.load %arg5[%c0_8, %c0_9, %c0_10] : memref<1x16x16xbf16, #tpu.memory_space<vmem>>, vector<1x16x16xbf16>
    %7 = vector.shape_cast %6 : vector<1x16x16xbf16> to vector<16x16xbf16>
    %c0_11 = arith.constant 0 : index
    %c0_12 = arith.constant 0 : index
    %8 = vector.load %arg6[%c0_11, %c0_12] : memref<64x32xf32, #tpu.memory_space<vmem>>, vector<64x32xf32>
    %cst = arith.constant dense<0.000000e+00> : vector<64x16xf32>
    %9 = tpu.matmul %8, %1, %cst {dimension_numbers = #tpu.dot_dimension_numbers<[1], [0], [0], [1], [0, 0, 1, 1], [], []>} : vector<64x32xf32>, vector<32x16xf32>, vector<64x16xf32> -> vector<64x16xf32>
    %c0_13 = arith.constant 0 : index
    %c0_14 = arith.constant 0 : index
    %10 = vector.load %arg7[%c0_13, %c0_14] : memref<64x1xf32, #tpu.memory_space<vmem>>, vector<64x1xf32>
    %11 = vector.broadcast %10 : vector<64x1xf32> to vector<64x16xf32>
    %12 = arith.addf %9, %11 : vector<64x16xf32>
    %c0_15 = arith.constant 0 : index
    %c0_16 = arith.constant 0 : index
    %13 = vector.load %arg8[%c0_15, %c0_16] : memref<128x32xf32, #tpu.memory_space<vmem>>, vector<128x32xf32>
    %cst_17 = arith.constant dense<0.000000e+00> : vector<128x16xf32>
    %14 = tpu.matmul %13, %3, %cst_17 {dimension_numbers = #tpu.dot_dimension_numbers<[1], [0], [0], [1], [0, 0, 1, 1], [], []>} : vector<128x32xf32>, vector<32x16xf32>, vector<128x16xf32> -> vector<128x16xf32>
    %c0_18 = arith.constant 0 : index
    %c0_19 = arith.constant 0 : index
    %15 = vector.load %arg9[%c0_18, %c0_19] : memref<128x1xf32, #tpu.memory_space<vmem>>, vector<128x1xf32>
    %16 = vector.broadcast %15 : vector<128x1xf32> to vector<128x16xf32>
    %17 = arith.addf %14, %16 : vector<128x16xf32>
    %18 = arith.truncf %12 : vector<64x16xf32> to vector<64x16xbf16>
    %19 = arith.truncf %17 : vector<128x16xf32> to vector<128x16xbf16>
    %20 = vector.extract_strided_slice %18 {offsets = [0, 0], sizes = [16, 16], strides = [1, 1]} : vector<64x16xbf16> to vector<16x16xbf16>
    %21 = vector.extract_strided_slice %19 {offsets = [0, 0], sizes = [16, 16], strides = [1, 1]} : vector<128x16xbf16> to vector<16x16xbf16>
    %22 = vector.extract_strided_slice %19 {offsets = [64, 0], sizes = [16, 16], strides = [1, 1]} : vector<128x16xbf16> to vector<16x16xbf16>
    %cst_20 = arith.constant dense<0.000000e+00> : vector<16x16xf32>
    %23 = tpu.matmul %20, %21, %cst_20 {dimension_numbers = #tpu.dot_dimension_numbers<[0], [0], [1], [1], [0, 1, 1, 1], [], []>} : vector<16x16xbf16>, vector<16x16xbf16>, vector<16x16xf32> -> vector<16x16xf32>
    %c0_21 = arith.constant 0 : index
    %24 = memref.load %arg16[%c0_21] : memref<4xf32, #tpu.memory_space<smem>>
    %25 = arith.extf %5 : vector<16x16xbf16> to vector<16x16xf32>
    %26 = vector.broadcast %24 : f32 to vector<16x16xf32>
    %27 = arith.mulf %26, %25 : vector<16x16xf32>
    %28 = arith.addf %23, %27 : vector<16x16xf32>
    %cst_22 = arith.constant 3.000000e+01 : f32
    %29 = vector.broadcast %cst_22 : f32 to vector<16x16xf32>
    %30 = arith.minimumf %28, %29 : vector<16x16xf32>
    %31 = arith.truncf %30 : vector<16x16xf32> to vector<16x16xbf16>
    %32 = math.exp %31 : vector<16x16xbf16>
    %33 = arith.mulf %32, %7 : vector<16x16xbf16>
    %cst_23 = arith.constant dense<0.000000e+00> : vector<16x16xf32>
    %34 = tpu.matmul %22, %33, %cst_23 {dimension_numbers = #tpu.dot_dimension_numbers<[1], [1], [0], [0], [0, 0, 1, 0], [], []>} : vector<16x16xbf16>, vector<16x16xbf16>, vector<16x16xf32> -> vector<16x16xf32>
    %35 = vector.extract_strided_slice %34 {offsets = [0, 0], sizes = [8, 16], strides = [1, 1]} : vector<16x16xf32> to vector<8x16xf32>
    %36 = vector.extract_strided_slice %34 {offsets = [8, 0], sizes = [1, 16], strides = [1, 1]} : vector<16x16xf32> to vector<1x16xf32>
    %cst_24 = arith.constant 9.99999993E-9 : f32
    %37 = vector.broadcast %cst_24 : f32 to vector<1x16xf32>
    %38 = arith.addf %36, %37 : vector<1x16xf32>
    %39 = tpu.reciprocal %38 {approx = true} : vector<1x16xf32> -> vector<1x16xf32>
    %40 = vector.broadcast %39 : vector<1x16xf32> to vector<8x16xf32>
    %41 = arith.mulf %35, %40 : vector<8x16xf32>
    %42 = vector.extract_strided_slice %18 {offsets = [16, 0], sizes = [16, 16], strides = [1, 1]} : vector<64x16xbf16> to vector<16x16xbf16>
    %43 = vector.extract_strided_slice %19 {offsets = [16, 0], sizes = [16, 16], strides = [1, 1]} : vector<128x16xbf16> to vector<16x16xbf16>
    %44 = vector.extract_strided_slice %19 {offsets = [80, 0], sizes = [16, 16], strides = [1, 1]} : vector<128x16xbf16> to vector<16x16xbf16>
    %cst_25 = arith.constant dense<0.000000e+00> : vector<16x16xf32>
    %45 = tpu.matmul %42, %43, %cst_25 {dimension_numbers = #tpu.dot_dimension_numbers<[0], [0], [1], [1], [0, 1, 1, 1], [], []>} : vector<16x16xbf16>, vector<16x16xbf16>, vector<16x16xf32> -> vector<16x16xf32>
    %c1 = arith.constant 1 : index
    %46 = memref.load %arg16[%c1] : memref<4xf32, #tpu.memory_space<smem>>
    %47 = arith.extf %5 : vector<16x16xbf16> to vector<16x16xf32>
    %48 = vector.broadcast %46 : f32 to vector<16x16xf32>
    %49 = arith.mulf %48, %47 : vector<16x16xf32>
    %50 = arith.addf %45, %49 : vector<16x16xf32>
    %cst_26 = arith.constant 3.000000e+01 : f32
    %51 = vector.broadcast %cst_26 : f32 to vector<16x16xf32>
    %52 = arith.minimumf %50, %51 : vector<16x16xf32>
    %53 = arith.truncf %52 : vector<16x16xf32> to vector<16x16xbf16>
    %54 = math.exp %53 : vector<16x16xbf16>
    %55 = arith.mulf %54, %7 : vector<16x16xbf16>
    %cst_27 = arith.constant dense<0.000000e+00> : vector<16x16xf32>
    %56 = tpu.matmul %44, %55, %cst_27 {dimension_numbers = #tpu.dot_dimension_numbers<[1], [1], [0], [0], [0, 0, 1, 0], [], []>} : vector<16x16xbf16>, vector<16x16xbf16>, vector<16x16xf32> -> vector<16x16xf32>
    %57 = vector.extract_strided_slice %56 {offsets = [0, 0], sizes = [8, 16], strides = [1, 1]} : vector<16x16xf32> to vector<8x16xf32>
    %58 = vector.extract_strided_slice %56 {offsets = [8, 0], sizes = [1, 16], strides = [1, 1]} : vector<16x16xf32> to vector<1x16xf32>
    %cst_28 = arith.constant 9.99999993E-9 : f32
    %59 = vector.broadcast %cst_28 : f32 to vector<1x16xf32>
    %60 = arith.addf %58, %59 : vector<1x16xf32>
    %61 = tpu.reciprocal %60 {approx = true} : vector<1x16xf32> -> vector<1x16xf32>
    %62 = vector.broadcast %61 : vector<1x16xf32> to vector<8x16xf32>
    %63 = arith.mulf %57, %62 : vector<8x16xf32>
    %64 = vector.extract_strided_slice %18 {offsets = [32, 0], sizes = [16, 16], strides = [1, 1]} : vector<64x16xbf16> to vector<16x16xbf16>
    %65 = vector.extract_strided_slice %19 {offsets = [32, 0], sizes = [16, 16], strides = [1, 1]} : vector<128x16xbf16> to vector<16x16xbf16>
    %66 = vector.extract_strided_slice %19 {offsets = [96, 0], sizes = [16, 16], strides = [1, 1]} : vector<128x16xbf16> to vector<16x16xbf16>
    %cst_29 = arith.constant dense<0.000000e+00> : vector<16x16xf32>
    %67 = tpu.matmul %64, %65, %cst_29 {dimension_numbers = #tpu.dot_dimension_numbers<[0], [0], [1], [1], [0, 1, 1, 1], [], []>} : vector<16x16xbf16>, vector<16x16xbf16>, vector<16x16xf32> -> vector<16x16xf32>
    %c2 = arith.constant 2 : index
    %68 = memref.load %arg16[%c2] : memref<4xf32, #tpu.memory_space<smem>>
    %69 = arith.extf %5 : vector<16x16xbf16> to vector<16x16xf32>
    %70 = vector.broadcast %68 : f32 to vector<16x16xf32>
    %71 = arith.mulf %70, %69 : vector<16x16xf32>
    %72 = arith.addf %67, %71 : vector<16x16xf32>
    %cst_30 = arith.constant 3.000000e+01 : f32
    %73 = vector.broadcast %cst_30 : f32 to vector<16x16xf32>
    %74 = arith.minimumf %72, %73 : vector<16x16xf32>
    %75 = arith.truncf %74 : vector<16x16xf32> to vector<16x16xbf16>
    %76 = math.exp %75 : vector<16x16xbf16>
    %77 = arith.mulf %76, %7 : vector<16x16xbf16>
    %cst_31 = arith.constant dense<0.000000e+00> : vector<16x16xf32>
    %78 = tpu.matmul %66, %77, %cst_31 {dimension_numbers = #tpu.dot_dimension_numbers<[1], [1], [0], [0], [0, 0, 1, 0], [], []>} : vector<16x16xbf16>, vector<16x16xbf16>, vector<16x16xf32> -> vector<16x16xf32>
    %79 = vector.extract_strided_slice %78 {offsets = [0, 0], sizes = [8, 16], strides = [1, 1]} : vector<16x16xf32> to vector<8x16xf32>
    %80 = vector.extract_strided_slice %78 {offsets = [8, 0], sizes = [1, 16], strides = [1, 1]} : vector<16x16xf32> to vector<1x16xf32>
    %cst_32 = arith.constant 9.99999993E-9 : f32
    %81 = vector.broadcast %cst_32 : f32 to vector<1x16xf32>
    %82 = arith.addf %80, %81 : vector<1x16xf32>
    %83 = tpu.reciprocal %82 {approx = true} : vector<1x16xf32> -> vector<1x16xf32>
    %84 = vector.broadcast %83 : vector<1x16xf32> to vector<8x16xf32>
    %85 = arith.mulf %79, %84 : vector<8x16xf32>
    %86 = vector.extract_strided_slice %18 {offsets = [48, 0], sizes = [16, 16], strides = [1, 1]} : vector<64x16xbf16> to vector<16x16xbf16>
    %87 = vector.extract_strided_slice %19 {offsets = [48, 0], sizes = [16, 16], strides = [1, 1]} : vector<128x16xbf16> to vector<16x16xbf16>
    %88 = vector.extract_strided_slice %19 {offsets = [112, 0], sizes = [16, 16], strides = [1, 1]} : vector<128x16xbf16> to vector<16x16xbf16>
    %cst_33 = arith.constant dense<0.000000e+00> : vector<16x16xf32>
    %89 = tpu.matmul %86, %87, %cst_33 {dimension_numbers = #tpu.dot_dimension_numbers<[0], [0], [1], [1], [0, 1, 1, 1], [], []>} : vector<16x16xbf16>, vector<16x16xbf16>, vector<16x16xf32> -> vector<16x16xf32>
    %c3 = arith.constant 3 : index
    %90 = memref.load %arg16[%c3] : memref<4xf32, #tpu.memory_space<smem>>
    %91 = arith.extf %5 : vector<16x16xbf16> to vector<16x16xf32>
    %92 = vector.broadcast %90 : f32 to vector<16x16xf32>
    %93 = arith.mulf %92, %91 : vector<16x16xf32>
    %94 = arith.addf %89, %93 : vector<16x16xf32>
    %cst_34 = arith.constant 3.000000e+01 : f32
    %95 = vector.broadcast %cst_34 : f32 to vector<16x16xf32>
    %96 = arith.minimumf %94, %95 : vector<16x16xf32>
    %97 = arith.truncf %96 : vector<16x16xf32> to vector<16x16xbf16>
    %98 = math.exp %97 : vector<16x16xbf16>
    %99 = arith.mulf %98, %7 : vector<16x16xbf16>
    %cst_35 = arith.constant dense<0.000000e+00> : vector<16x16xf32>
    %100 = tpu.matmul %88, %99, %cst_35 {dimension_numbers = #tpu.dot_dimension_numbers<[1], [1], [0], [0], [0, 0, 1, 0], [], []>} : vector<16x16xbf16>, vector<16x16xbf16>, vector<16x16xf32> -> vector<16x16xf32>
    %101 = vector.extract_strided_slice %100 {offsets = [0, 0], sizes = [8, 16], strides = [1, 1]} : vector<16x16xf32> to vector<8x16xf32>
    %102 = vector.extract_strided_slice %100 {offsets = [8, 0], sizes = [1, 16], strides = [1, 1]} : vector<16x16xf32> to vector<1x16xf32>
    %cst_36 = arith.constant 9.99999993E-9 : f32
    %103 = vector.broadcast %cst_36 : f32 to vector<1x16xf32>
    %104 = arith.addf %102, %103 : vector<1x16xf32>
    %105 = tpu.reciprocal %104 {approx = true} : vector<1x16xf32> -> vector<1x16xf32>
    %106 = vector.broadcast %105 : vector<1x16xf32> to vector<8x16xf32>
    %107 = arith.mulf %101, %106 : vector<8x16xf32>
    %108 = tpu.concatenate %41, %63, %85, %107 in 0 : vector<8x16xf32>, vector<8x16xf32>, vector<8x16xf32>, vector<8x16xf32> -> vector<32x16xf32>
    %c0_37 = arith.constant 0 : index
    %c0_38 = arith.constant 0 : index
    %109 = vector.load %arg10[%c0_37, %c0_38] : memref<64x32xf32, #tpu.memory_space<vmem>>, vector<64x32xf32>
    %cst_39 = arith.constant dense<0.000000e+00> : vector<64x16xf32>
    %110 = tpu.matmul %109, %1, %cst_39 {dimension_numbers = #tpu.dot_dimension_numbers<[1], [0], [0], [1], [0, 0, 1, 1], [], []>} : vector<64x32xf32>, vector<32x16xf32>, vector<64x16xf32> -> vector<64x16xf32>
    %c0_40 = arith.constant 0 : index
    %c0_41 = arith.constant 0 : index
    %111 = vector.load %arg11[%c0_40, %c0_41] : memref<64x32xf32, #tpu.memory_space<vmem>>, vector<64x32xf32>
    %cst_42 = arith.constant dense<0.000000e+00> : vector<64x16xf32>
    %112 = tpu.matmul %111, %108, %cst_42 {dimension_numbers = #tpu.dot_dimension_numbers<[1], [0], [0], [1], [0, 0, 1, 1], [], []>} : vector<64x32xf32>, vector<32x16xf32>, vector<64x16xf32> -> vector<64x16xf32>
    %113 = arith.addf %110, %112 : vector<64x16xf32>
    %c0_43 = arith.constant 0 : index
    %c0_44 = arith.constant 0 : index
    %114 = vector.load %arg12[%c0_43, %c0_44] : memref<64x1xf32, #tpu.memory_space<vmem>>, vector<64x1xf32>
    %115 = vector.broadcast %114 : vector<64x1xf32> to vector<64x16xf32>
    %116 = arith.mulf %113, %115 : vector<64x16xf32>
    %c0_45 = arith.constant 0 : index
    %c0_46 = arith.constant 0 : index
    %117 = vector.load %arg13[%c0_45, %c0_46] : memref<64x1xf32, #tpu.memory_space<vmem>>, vector<64x1xf32>
    %118 = vector.broadcast %117 : vector<64x1xf32> to vector<64x16xf32>
    %119 = arith.addf %116, %118 : vector<64x16xf32>
    %cst_47 = arith.constant 0.000000e+00 : f32
    %120 = vector.broadcast %cst_47 : f32 to vector<64x16xf32>
    %121 = arith.maximumf %119, %120 : vector<64x16xf32>
    %c0_48 = arith.constant 0 : index
    %c0_49 = arith.constant 0 : index
    %122 = vector.load %arg14[%c0_48, %c0_49] : memref<32x64xf32, #tpu.memory_space<vmem>>, vector<32x64xf32>
    %cst_50 = arith.constant dense<0.000000e+00> : vector<32x16xf32>
    %123 = tpu.matmul %122, %121, %cst_50 {dimension_numbers = #tpu.dot_dimension_numbers<[1], [0], [0], [1], [0, 0, 1, 1], [], []>} : vector<32x64xf32>, vector<64x16xf32>, vector<32x16xf32> -> vector<32x16xf32>
    %c0_51 = arith.constant 0 : index
    %c0_52 = arith.constant 0 : index
    %124 = vector.load %arg15[%c0_51, %c0_52] : memref<32x1xf32, #tpu.memory_space<vmem>>, vector<32x1xf32>
    %125 = vector.broadcast %124 : vector<32x1xf32> to vector<32x16xf32>
    %126 = arith.addf %123, %125 : vector<32x16xf32>
    %127 = arith.addf %1, %126 : vector<32x16xf32>
    %c0_53 = arith.constant 0 : index
    %c0_54 = arith.constant 0 : index
    %c0_55 = arith.constant 0 : index
    %128 = vector.load %arg17[%c0_53, %c0_54, %c0_55] : memref<1x32x16xf32, #tpu.memory_space<vmem>>, vector<1x32x16xf32>
    %129 = vector.shape_cast %128 : vector<1x32x16xf32> to vector<32x16xf32>
    %130 = vector.shape_cast %127 : vector<32x16xf32> to vector<1x32x16xf32>
    tpu.vector_store %arg17[%c0_53, %c0_54, %c0_55], %130 {strides = array<i32>} : memref<1x32x16xf32, #tpu.memory_space<vmem>>, vector<1x32x16xf32>,
    return
  }
  func.func @transform_0(%arg0: i32, %arg1: i32) -> (i32, i32, i32) {
    %c0_i32 = arith.constant 0 : i32
    %c0_i32_0 = arith.constant 0 : i32
    return %arg0, %c0_i32, %arg1 : i32, i32, i32
  }
  func.func @transform_1(%arg0: i32, %arg1: i32) -> (i32, i32, i32) {
    %c0_i32 = arith.constant 0 : i32
    %c0_i32_0 = arith.constant 0 : i32
    %c0_i32_1 = arith.constant 0 : i32
    return %arg0, %c0_i32, %c0_i32_0 : i32, i32, i32
  }
  func.func @transform_2(%arg0: i32, %arg1: i32) -> (i32, i32, i32) {
    %c0_i32 = arith.constant 0 : i32
    %c0_i32_0 = arith.constant 0 : i32
    return %arg0, %arg1, %c0_i32 : i32, i32, i32
  }
  func.func @transform_3(%arg0: i32, %arg1: i32) -> (i32, i32, i32) {
    %c0_i32 = arith.constant 0 : i32
    %c0_i32_0 = arith.constant 0 : i32
    return %arg0, %arg1, %c0_i32 : i32, i32, i32
  }
  func.func @transform_4(%arg0: i32, %arg1: i32) -> (i32, i32) {
    %c0_i32 = arith.constant 0 : i32
    %c0_i32_0 = arith.constant 0 : i32
    %c0_i32_1 = arith.constant 0 : i32
    return %c0_i32, %c0_i32_0 : i32, i32
  }
  func.func @transform_5(%arg0: i32, %arg1: i32) -> (i32, i32) {
    %c0_i32 = arith.constant 0 : i32
    %c0_i32_0 = arith.constant 0 : i32
    %c0_i32_1 = arith.constant 0 : i32
    return %c0_i32, %c0_i32_0 : i32, i32
  }
  func.func @transform_6(%arg0: i32, %arg1: i32) -> (i32, i32) {
    %c0_i32 = arith.constant 0 : i32
    %c0_i32_0 = arith.constant 0 : i32
    %c0_i32_1 = arith.constant 0 : i32
    return %c0_i32, %c0_i32_0 : i32, i32
  }
  func.func @transform_7(%arg0: i32, %arg1: i32) -> (i32, i32) {
    %c0_i32 = arith.constant 0 : i32
    %c0_i32_0 = arith.constant 0 : i32
    %c0_i32_1 = arith.constant 0 : i32
    return %c0_i32, %c0_i32_0 : i32, i32
  }
  func.func @transform_8(%arg0: i32, %arg1: i32) -> (i32, i32) {
    %c0_i32 = arith.constant 0 : i32
    %c0_i32_0 = arith.constant 0 : i32
    %c0_i32_1 = arith.constant 0 : i32
    return %c0_i32, %c0_i32_0 : i32, i32
  }
  func.func @transform_9(%arg0: i32, %arg1: i32) -> (i32, i32) {
    %c0_i32 = arith.constant 0 : i32
    %c0_i32_0 = arith.constant 0 : i32
    %c0_i32_1 = arith.constant 0 : i32
    return %c0_i32, %c0_i32_0 : i32, i32
  }
  func.func @transform_10(%arg0: i32, %arg1: i32) -> (i32, i32) {
    %c0_i32 = arith.constant 0 : i32
    %c0_i32_0 = arith.constant 0 : i32
    %c0_i32_1 = arith.constant 0 : i32
    return %c0_i32, %c0_i32_0 : i32, i32
  }
  func.func @transform_11(%arg0: i32, %arg1: i32) -> (i32, i32) {
    %c0_i32 = arith.constant 0 : i32
    %c0_i32_0 = arith.constant 0 : i32
    %c0_i32_1 = arith.constant 0 : i32
    return %c0_i32, %c0_i32_0 : i32, i32
  }
  func.func @transform_12(%arg0: i32, %arg1: i32) -> (i32, i32) {
    %c0_i32 = arith.constant 0 : i32
    %c0_i32_0 = arith.constant 0 : i32
    %c0_i32_1 = arith.constant 0 : i32
    return %c0_i32, %c0_i32_0 : i32, i32
  }
  func.func @transform_13(%arg0: i32, %arg1: i32) -> (i32, i32) {
    %c0_i32 = arith.constant 0 : i32
    %c0_i32_0 = arith.constant 0 : i32
    %c0_i32_1 = arith.constant 0 : i32
    return %c0_i32, %c0_i32_0 : i32, i32
  }
  func.func @transform_14(%arg0: i32, %arg1: i32) -> i32 {
    %c0_i32 = arith.constant 0 : i32
    %c0_i32_0 = arith.constant 0 : i32
    return %c0_i32 : i32
  }
  func.func @transform_15(%arg0: i32, %arg1: i32) -> (i32, i32, i32) {
    %c0_i32 = arith.constant 0 : i32
    %c0_i32_0 = arith.constant 0 : i32
    return %arg0, %c0_i32, %arg1 : i32, i32, i32
  }
}

</mosaic_0001>

<bundles_post_ra>
// kernel: tpu_custom_call.1
= control target key start
LH: loop header
LB: loop body
LE: loop exit
PB: predicated region body
PF: predicated region fallthrough
CT: control target
= control target key end

     0   :  { %s2598_s0 = inlined_call_operand.vmem [shape: f32[2,32,16], index: 0, kind: input, shape index: {}]   ;;  %s2599_s1 = inlined_call_operand.vmem [shape: f32[2,32,16], index: 1, kind: input, shape index: {}]   ;;  %s2600_s2 = inlined_call_operand.vmem [shape: bf16[2,16,16], index: 2, kind: input, shape index: {}]   ;;  %s2601_s3 = inlined_call_operand.vmem [shape: bf16[2,16,16], index: 3, kind: input, shape index: {}]   ;;  %s2602_s4 = inlined_call_operand.vmem [shape: f32[64,32], index: 4, kind: input, shape index: {}]   ;;  %s2603_s5 = inlined_call_operand.vmem [shape: f32[64,1], index: 5, kind: input, shape index: {}]   ;;  %s2604_s6 = inlined_call_operand.vmem [shape: f32[128,32], index: 6, kind: input, shape index: {}]   ;;  %s2605_s7 = inlined_call_operand.vmem [shape: f32[128,1], index: 7, kind: input, shape index: {}]   ;;  %s2606_s8 = inlined_call_operand.vmem [shape: f32[64,32], index: 8, kind: input, shape index: {}]   ;;  %s2607_s9 = inlined_call_operand.vmem [shape: f32[64,32], index: 9, kind: input, shape index: {}]   ;;  %s2608_s10 = inlined_call_operand.vmem [shape: f32[64,1], index: 10, kind: input, shape index: {}]   ;;  %s2609_s11 = inlined_call_operand.vmem [shape: f32[64,1], index: 11, kind: input, shape index: {}]   ;;  %s2610_s12 = inlined_call_operand.vmem [shape: f32[32,64], index: 12, kind: input, shape index: {}]   ;;  %s2611_s13 = inlined_call_operand.vmem [shape: f32[32,1], index: 13, kind: input, shape index: {}]   ;;  %s2612_s14 = inlined_call_operand.vmem [shape: f32[4], index: 14, kind: input, shape index: {}]   ;;  %s2613_s15 = inlined_call_operand.vmem [shape: f32[2,32,16], index: 15, kind: output, shape index: {}]  }
   0x1   :  { %2614 = sst [smem:[#allocation5_spill]] %s2598_s0 }
   0x2   :  { %20 = vsyncpa [#allocation3], 0  ;;  %s2179_s18 = smov 0   ;;  %s2181_s19 = smov 0  }
   0x3   :  { %s2183_s20 = smov 0  }
   0x4 LB: > { %s1889_s21 = sadd.s32 4294967295, %s2095_s20   ;;  %s38_s22 = sadd.s32 1, %s2091_s19  ;;  %s2095_s20 = sphi %s2183_s20, %s26_s20   ;;  %s2091_s19 = sphi %s2181_s19, %s2617_s19   ;;  %s2087_s18 = sphi %s2179_s18, %s2616_s18  }
   0x5   : > { %p40_p0 = scmp.ge.s32.totalorder %s38_s22, 2  ;;  %p1891_p1 = scmp.ge.s32.totalorder %s2095_s20, 1 }
   0x6   : > { %p412_p2 = scmp.lt.s32.totalorder %s2095_s20, 3  ;;  %p1992_p4 = scmp.eq.s32.totalorder %s1889_s21, 0 }
   0x7   : > { %s2619_s22 = smov (%p40_p0, %s38_s22), 0  ;;  %s454_s25 = sshll.u32 %s2612_s14, 4  ;;  %s455_s25 = int_to_ptr.vmem [resolvable:$true] %s454_s25 }
   0x8   : > { %p413_p3 = pnand %p1891_p1, %p412_p2  ;;  %s2097_s26 = smov [#allocation2]  }
   0xa   : > { %p1988_p5 = pneg %p413_p3  ;;  %512 = sbr.rel (%p413_p3) target bundleno = 1117 (0x45d), region = 80 }
   0xc   : > { %p1989_p6 = pnand %p1992_p4, %p1988_p5 }
   0xe   : > { %1991 = dma.vmem_to_smem (!%p1989_p6), %s455_s25, 16, %s2097_s26, [#allocation3]  }
   0xf   : > { %2082 = dma.done.wait (%p1992_p4), [#allocation3], 16  }
  0x10   : > { %2084 = vsyncadd (%p1992_p4), [#allocation3], 4294967280 }
  0x11   : > { %519 = sfence }
  0x12   : > { %v653_v0 = vld [vmem:[%s2603_s5] sm:$0xff]  ;;  %p591_p7 = scmp.lt.s32.totalorder %s2087_s18, 1  ;;  %v2098_v1 = vmov 0   ;;  %v655_v2 = vld [vmem:[%s2603_s5 + $0x10] sm:$0xff]  ;;  %s2615_s0 = sld [smem:[#allocation5_spill]]  ;;  %v654_v7 = vld [vmem:[%s2603_s5 + $0x8] sm:$0xff] }
  0x13   : > { %2020 = vset.pattern.permute.xlu0 %v2098_v1  ;;  %2021 = vset.pattern.permute.xlu1 %v2098_v1  ;;  %v656_v10 = vld [vmem:[%s2603_s5 + $0x18] sm:$0xff]  ;;  %v645_v13 = vld [vmem:[%s2602_s4] sm:$0xff]  ;;  %vm701_vm0 = vcmask 261120   ;;  %v658_v17 = vld [vmem:[%s2603_s5 + $0x28] sm:$0xff]  ;;  %vm1050_vm1 = vcmask 130048   ;;  %s1016_s24 = sld [smem:[#allocation2]] }
  0x14   : > { %663 = vperm.xlu0 %2020, %v653_v0   ;;  %s2621_s18 = smov (!%p591_p7, %s2087_s18), 1  ;;  %2022 = vset.pattern.permute.xlu2 %v2098_v1  ;;  %v767_v14 = vld [vmem:[%s2604_s6] sm:$0xff]  ;;  %v652_v15 = vld [vmem:[%s2602_s4 + $0x38] sm:$0xff]  ;;  %v646_v18 = vld [vmem:[%s2602_s4 + $0x8] sm:$0xff]  ;;  %s2465_s29 = sld [smem:[#allocation2 + $0x2]]  ;;  %vm1695_vm2 = vcmask 523264  }
  0x15   : > { %673 = vperm.xlu1 %2021, %v655_v2   ;;  %s2210_s16 = sshll.u32 %s2621_s18, 5  ;;  %v657_v16 = vld [vmem:[%s2603_s5 + $0x20] sm:$0xff]  ;;  %v768_v19 = vld [vmem:[%s2604_s6 + $0x8] sm:$0xff]  ;;  %v786_v21 = vld [vmem:[%s2605_s7 + $0x18] sm:$0xff]  ;;  %s1965_s21 = sshll.u32 %s2621_s18, 3 }
  0x16   : > { %s603_s26 = scalar_lea.vmem %s2599_s1, %s2210_s16  ;;  %v783_v20 = vld [vmem:[%s2605_s7] sm:$0xff]  ;;  %v647_v22 = vld [vmem:[%s2602_s4 + $0x10] sm:$0xff]  ;;  %v784_v24 = vld [vmem:[%s2605_s7 + $0x8] sm:$0xff]  ;;  %s612_s28 = scalar_lea.vmem %s2600_s2, %s1965_s21 }
  0x17   : > { %v640_v4 = vld [vmem:[%s603_s26 + $0x18] sm:$0xff]  ;;  %v639_v6 = vld [vmem:[%s603_s26 + $0x10] sm:$0xff]  ;;  %v638_v9 = vld [vmem:[%s603_s26 + $0x8] sm:$0xff]  ;;  %801 = vperm.xlu2 %2022, %v783_v20   ;;  %s622_s17 = scalar_lea.vmem %s2601_s3, %s1965_s21  ;;  %s2482_s18 = sld [smem:[#allocation2 + $0x3]] }
  0x18   : > { %s2216_s23 = scalar_lea.vmem %s2615_s0, %s2210_s16  ;;  %939 = vmatpush.msra.mxu1 %v640_v4  ;;  %v637_v12 = vld [vmem:[%s603_s26] sm:$0xff]  ;;  %v769_v23 = vld [vmem:[%s2604_s6 + $0x10] sm:$0xff]  ;;  %v660_v25 = vld [vmem:[%s2603_s5 + $0x38] sm:$0xff]  ;;  %s1932_s26 = sld [smem:[#allocation2 + $0x1]] }
  0x19   : > { %v636_v3 = vld [vmem:[%s2216_s23 + $0x18] sm:$0xff]  ;;  %v635_v5 = vld [vmem:[%s2216_s23 + $0x10] sm:$0xff]  ;;  %v634_v8 = vld [vmem:[%s2216_s23 + $0x8] sm:$0xff] }
  0x1a   : > { %738 = vmatpush.msra.mxu0 %v636_v3  ;;  %1976 = vmatpush.msra.mxu3 %v636_v3  ;;  %v633_v11 = vld [vmem:[%s2216_s23] sm:$0xff]  ;;  %v648_v26 = vld [vmem:[%s2602_s4 + $0x18] sm:$0xff]  ;;  %v785_v28 = vld [vmem:[%s2605_s7 + $0x10] sm:$0xff] }
  0x1b   : > { %940 = vmatpush.msra.mxu1 %v639_v6  ;;  %v770_v27 = vld [vmem:[%s2604_s6 + $0x18] sm:$0xff]  ;;  %v788_v29 = vld [vmem:[%s2605_s7 + $0x28] sm:$0xff]  ;;  %v649_v30 = vld [vmem:[%s2602_s4 + $0x20] sm:$0xff] }
  0x1c   : > { %739 = vmatpush.msra.mxu0 %v635_v5  ;;  %668 = vperm.xlu0 %2020, %v654_v7   ;;  %v771_v31 = vld [vmem:[%s2604_s6 + $0x20] sm:$0xff]  ;;  %v659_v32 = vld [vmem:[%s2603_s5 + $0x30] sm:$0xff]  ;;  %v790_v33 = vld [vmem:[%s2605_s7 + $0x38] sm:$0xff] }
  0x1d   : > { %1977 = vmatpush.msra.mxu3 %v635_v5  ;;  %941 = vmatpush.msra.mxu1 %v638_v9  ;;  %v650_v34 = vld [vmem:[%s2602_s4 + $0x28] sm:$0xff]  ;;  %v787_v36 = vld [vmem:[%s2605_s7 + $0x20] sm:$0xff]  ;;  %v651_v37 = vld [vmem:[%s2602_s4 + $0x30] sm:$0xff] }
  0x1e   : > { %740 = vmatpush.msra.mxu0 %v634_v8  ;;  %678 = vperm.xlu1 %2021, %v656_v10   ;;  %v772_v35 = vld [vmem:[%s2604_s6 + $0x28] sm:$0xff]  ;;  %v773_v38 = vld [vmem:[%s2604_s6 + $0x30] sm:$0xff]  ;;  %v774_v40 = vld [vmem:[%s2604_s6 + $0x38] sm:$0xff] }
  0x1f   : > { %1978 = vmatpush.msra.mxu3 %v634_v8  ;;  %942 = vmatpush.msra.mxu1 %v637_v12  ;;  %v789_v39 = vld [vmem:[%s2605_s7 + $0x30] sm:$0xff] }
  0x20   : > { %741 = vmatpush.msra.mxu0 %v633_v11  ;;  %1914 = vmatmul.msk.f32.vlgmr.msra.gmra.mxu1 %vm701_vm0, %v767_v14 }
  0x21   : > { %1906 = vmatmul.msk.f32.vlgmr.msra.gmra.mxu0 %vm701_vm0, %v645_v13  ;;  %1979 = vmatpush.msra.mxu3 %v633_v11 }
  0x22   : > { %1518 = vmatpush.msrb.mxu0 %v636_v3  ;;  %1913 = vmatmul.msk.f32.vlgmr.msra.gmra.mxu3 %vm701_vm0, %v652_v15 }
  0x23   : > { %1980 = vmatpush.msrb.mxu3 %v640_v4  ;;  %806 = vperm.xlu2 %2022, %v784_v24   ;;  %v782_v24 = vld [vmem:[%s2604_s6 + $0x78] sm:$0xff] }
  0x24   : > { %1519 = vmatpush.msrb.mxu0 %v635_v5  ;;  %683 = vperm.xlu0 %2020, %v657_v16  }
  0x25   : > { %1981 = vmatpush.msrb.mxu3 %v639_v6 }
  0x26   : > { %1520 = vmatpush.msrb.mxu0 %v634_v8  ;;  %688 = vperm.xlu1 %2021, %v658_v17  }
  0x27   : > { %1982 = vmatpush.msrb.mxu3 %v638_v9 }
  0x28   : > { %1521 = vmatpush.msrb.mxu0 %v633_v11  ;;  %1915 = vmatmul.msk.f32.gmra.mxu1 %vm701_vm0, %v768_v19 }
  0x29   : > { %1907 = vmatmul.msk.f32.gmra.mxu0 %vm701_vm0, %v646_v18  ;;  %1983 = vmatpush.msrb.mxu3 %v637_v12 }
  0x2a   : > { %1929 = vmatmul.msk.f32.vlgmr.msrb.gmra.mxu3 %vm701_vm0, %v782_v24 }
  0x2b   : > { %811 = vperm.xlu2 %2022, %v785_v28  }
  0x2c   : > { %816 = vperm.xlu0 %2020, %v786_v21   ;;  %v775_v21 = vld [vmem:[%s2604_s6 + $0x40] sm:$0xff] }
  0x30   : > { %1916 = vmatmul.msk.f32.gmra.mxu1 %vm701_vm0, %v769_v23 }
  0x31   : > { %1908 = vmatmul.msk.f32.gmra.mxu0 %vm701_vm0, %v647_v22 }
  0x33   : > { %693 = vperm.xlu2 %2022, %v659_v32  }
  0x34   : > { %698 = vperm.xlu0 %2020, %v660_v25  }
  0x38   : > { %1917 = vmatmul.msk.f32.gmra.mxu1 %vm701_vm0, %v770_v27 }
  0x39   : > { %1909 = vmatmul.msk.f32.gmra.mxu0 %vm701_vm0, %v648_v26  ;;  %v776_v26 = vld [vmem:[%s2604_s6 + $0x48] sm:$0xff] }
  0x3b   : > { %821 = vperm.xlu2 %2022, %v787_v36  }
  0x3c   : > { %826 = vperm.xlu0 %2020, %v788_v29  }
  0x40   : > { %1918 = vmatmul.msk.f32.gmra.mxu1 %vm701_vm0, %v771_v31 }
  0x41   : > { %1910 = vmatmul.msk.f32.gmra.mxu0 %vm701_vm0, %v649_v30 }
  0x43   : > { %831 = vperm.xlu2 %2022, %v789_v39  }
  0x44   : > { %836 = vperm.xlu0 %2020, %v790_v33  }
  0x48   : > { %1919 = vmatmul.msk.f32.gmra.mxu1 %vm701_vm0, %v772_v35 }
  0x49   : > { %1911 = vmatmul.msk.f32.gmra.mxu0 %vm701_vm0, %v650_v34 }
  0x50   : > { %1920 = vmatmul.msk.f32.gmra.mxu1 %vm701_vm0, %v773_v38 }
  0x51   : > { %1912 = vmatmul.msk.f32.gmra.mxu0 %vm701_vm0, %v651_v37  ;;  %v777_v37 = vld [vmem:[%s2604_s6 + $0x50] sm:$0xff] }
  0x58   : > { %1921 = vmatmul.msk.f32.gmra.mxu1 %vm701_vm0, %v774_v40 }
  0x60   : > { %1922 = vmatmul.msk.f32.gmra.mxu1 %vm701_vm0, %v775_v21  ;;  %v1604_v21 = vld [vmem:[%s2609_s11 + $0x8] sm:$0xff] }
  0x68   : > { %1923 = vmatmul.msk.f32.gmra.mxu1 %vm701_vm0, %v776_v26 }
  0x70   : > { %1924 = vmatmul.msk.f32.gmra.mxu1 %vm701_vm0, %v777_v37 }
  0x71   : > { %v802_v42 = vpop.permute.xlu2 %801 }
  0x7d   : > { %v807_v47 = vpop.permute.xlu2 %806 }
  0x85   : > { %v812_v57 = vpop.permute.xlu2 %811 }
  0x86   : > { %v664_v41 = vpop.permute.xlu0 %663 }
  0x87   : > { %v674_v55 = vpop.permute.xlu1 %673 }
  0x8d   : > { %v694_v39 = vpop.permute.xlu2 %693 }
  0x8e   : > { %v669_v45 = vpop.permute.xlu0 %668 }
  0x90   : > { %v679_v2 = vpop.permute.xlu1 %678 }
  0x96   : > { %v684_v54 = vpop.permute.xlu0 %683 }
  0x98   : > { %v689_v27 = vpop.permute.xlu1 %688 }
  0x9d   : > { %v944_v44 = vpop.f32.mrf.mxu1 }
  0x9e   : > { %v743_v43 = vpop.f32.mrf.mxu0  ;;  %v945_v46 = vadd.f32 %v944_v44, %v802_v42  ;;  %v817_v1 = vpop.permute.xlu0 %816 }
  0x9f   : > { %v744_v0 = vadd.f32 %v743_v43, %v664_v41 }
  0xa0   : > { %v1000_v48 = vpack.c.bf16 %v945_v46, %v945_v46  ;;  %v778_v46 = vld [vmem:[%s2604_s6 + $0x58] sm:$0xff] }
  0xa1   : > { %v992_v10 = vpack.c.bf16 %v744_v0, %v744_v0  ;;  %1925 = vmatmul.msk.f32.gmra.mxu1 %vm701_vm0, %v778_v46 }
  0xa2   : > { %v1046_v52 = vunpack.c.l.b16 %v1000_v48  ;;  %v779_v48 = vld [vmem:[%s2604_s6 + $0x60] sm:$0xff] }
  0xa3   : > { %v1024_v18 = vunpack.c.l.b16 %v992_v10  ;;  %v1605_v10 = vld [vmem:[%s2609_s11 + $0x10] sm:$0xff] }
  0xa5   : > { %v947_v50 = vpop.f32.mrf.mxu1  ;;  %v764_v31 = vpop.f32.mrf.mxu3 }
  0xa6   : > { %v746_v49 = vpop.f32.mrf.mxu0  ;;  %v948_v51 = vadd.f32 %v947_v50, %v807_v47  ;;  %v699_v33 = vpop.permute.xlu0 %698  ;;  %v781_v50 = vld [vmem:[%s2604_s6 + $0x70] sm:$0xff] }
  0xa7   : > { %v747_v62 = vadd.f32 %v746_v49, %v669_v45  ;;  %v765_v34 = vadd.f32 %v764_v31, %v699_v33  ;;  %v780_v49 = vld [vmem:[%s2604_s6 + $0x68] sm:$0xff]  ;;  %v1674_v33 = vld [vmem:[%s2611_s13 + $0x18] sm:$0xff] }
  0xa8   : > { %v1001_v53 = vpack.c.bf16 %v948_v51, %v948_v51  ;;  %v791_v51 = vld [vmem:[%s2605_s7 + $0x40] sm:$0xff]  ;;  %v1672_v31 = vld [vmem:[%s2611_s13 + $0x8] sm:$0xff] }
  0xa9   : > { %v993_v4 = vpack.c.bf16 %v747_v62, %v747_v62  ;;  %v999_v41 = vpack.c.bf16 %v765_v34, %v765_v34  ;;  %1926 = vmatmul.msk.f32.gmra.mxu1 %vm701_vm0, %v779_v48  ;;  %v1610_v62 = vld [vmem:[%s2609_s11 + $0x38] sm:$0xff] }
  0xaa   : > { %v1047_v56 = vunpack.c.l.b16 %v1001_v53  ;;  %v795_v53 = vld [vmem:[%s2605_s7 + $0x60] sm:$0xff] }
  0xab   : > { %v1025_v14 = vunpack.c.l.b16 %v993_v4  ;;  %v1313_v44 = vunpack.c.l.b16 %v999_v41  ;;  %v1549_v4 = vld [vmem:[%s2608_s10 + $0x10] sm:$0xff]  ;;  %v1969_v41 = vld [vmem:[%s612_s28] sm:$0xff]  }
  0xac   : > { %v1048_v58 = vpack.c.b16 %v1047_v56, %v1046_v52  ;;  %v794_v52 = vld [vmem:[%s2605_s7 + $0x58] sm:$0xff]  ;;  %v797_v56 = vld [vmem:[%s2605_s7 + $0x70] sm:$0xff] }
  0xad   : > { %v950_v60 = vpop.f32.mrf.mxu1  ;;  %v1026_v22 = vpack.c.b16 %v1025_v14, %v1024_v18  ;;  %v1603_v18 = vld [vmem:[%s2609_s11] sm:$0xff] }
  0xae   : > { %v749_v59 = vpop.f32.mrf.mxu0  ;;  %1061 = vmatpush.bf16.msra.mxu2 %v1048_v58  ;;  %v951_v61 = vadd.f32 %v950_v60, %v812_v57  ;;  %v798_v57 = vld [vmem:[%s2605_s7 + $0x78] sm:$0xff]  ;;  %v1553_v60 = vld [vmem:[%s2608_s10 + $0x30] sm:$0xff] }
  0xaf   : > { %v750_v63 = vadd.f32 %v749_v59, %v674_v55  ;;  %v792_v55 = vld [vmem:[%s2605_s7 + $0x48] sm:$0xff]  ;;  %v1554_v58 = vld [vmem:[%s2608_s10 + $0x38] sm:$0xff]  ;;  %v793_v59 = vld [vmem:[%s2605_s7 + $0x50] sm:$0xff] }
  0xb0   : > { %v1002_v3 = vpack.c.bf16 %v951_v61, %v951_v61  ;;  %v1552_v61 = vld [vmem:[%s2608_s10 + $0x28] sm:$0xff] }
  0xb1   : > { %v994_v7 = vpack.c.bf16 %v750_v63, %v750_v63  ;;  %1927 = vmatmul.msk.f32.gmra.mxu1 %vm701_vm0, %v780_v49  ;;  %v1609_v63 = vld [vmem:[%s2609_s11 + $0x30] sm:$0xff] }
  0xb2   : > { %v1144_v11 = vunpack.c.l.b16 %v1002_v3  ;;  %v1550_v3 = vld [vmem:[%s2608_s10 + $0x18] sm:$0xff] }
  0xb3   : > { %v1122_v15 = vunpack.c.l.b16 %v994_v7  ;;  %v822_v7 = vpop.permute.xlu2 %821 }
  0xb5   : > { %v953_v6 = vpop.f32.mrf.mxu1 }
  0xb6   : > { %v752_v5 = vpop.f32.mrf.mxu0  ;;  %v954_v9 = vadd.f32 %v953_v6, %v817_v1  ;;  %v1608_v1 = vld [vmem:[%s2609_s11 + $0x28] sm:$0xff]  ;;  %v1607_v6 = vld [vmem:[%s2609_s11 + $0x20] sm:$0xff] }
  0xb7   : > { %v753_v8 = vadd.f32 %v752_v5, %v679_v2  ;;  %v1551_v2 = vld [vmem:[%s2608_s10 + $0x20] sm:$0xff] }
  0xb8   : > { %v1003_v13 = vpack.c.bf16 %v954_v9, %v954_v9  ;;  %v827_v9 = vpop.permute.xlu0 %826 }
  0xb9   : > { %v995_v12 = vpack.c.bf16 %v753_v8, %v753_v8  ;;  %1928 = vmatmul.msk.f32.gmra.mxu1 %vm701_vm0, %v781_v50  ;;  %v1606_v8 = vld [vmem:[%s2609_s11 + $0x18] sm:$0xff] }
  0xba   : > { %v1145_v17 = vunpack.c.l.b16 %v1003_v13  ;;  %v1548_v13 = vld [vmem:[%s2608_s10 + $0x8] sm:$0xff] }
  0xbb   : > { %v1123_v16 = vunpack.c.l.b16 %v995_v12 }
  0xbc   : > { %v1146_v20 = vpack.c.b16 %v1145_v17, %v1144_v11  ;;  %v1547_v17 = vld [vmem:[%s2608_s10] sm:$0xff] }
  0xbd   : > { %v1124_v19 = vpack.c.b16 %v1123_v16, %v1122_v15  ;;  %v956_v0 = vpop.f32.mrf.mxu1 }
  0xbe   : > { %v755_v23 = vpop.f32.mrf.mxu0  ;;  %1158 = vmatpush.bf16.msrb.mxu2 %v1146_v20  ;;  %v957_v11 = vadd.f32 %v956_v0, %v822_v7 }
  0xbf   : > { %2023 = vxpose.binary.xlu1.c.b16.start.end [1/2] (short) (narrow) %v1124_v19, %v1026_v22, 16  ;;  %v756_v25 = vadd.f32 %v755_v23, %v684_v54  ;;  %v796_v54 = vld [vmem:[%s2605_s7 + $0x68] sm:$0xff] }
  0xc0   : > { %v1004_v15 = vpack.c.bf16 %v957_v11, %v957_v11  ;;  %v837_v26 = vpop.permute.xlu0 %836 }
  0xc1   : > { %v996_v29 = vpack.c.bf16 %v756_v25, %v756_v25  ;;  %v1671_v25 = vld [vmem:[%s2611_s13] sm:$0xff] }
  0xc2   : > { %v1239_v19 = vunpack.c.l.b16 %v1004_v15 }
  0xc3   : > { %v1217_v35 = vunpack.c.l.b16 %v996_v29 }
  0xc5   : > { %v959_v5 = vpop.f32.mrf.mxu1 }
  0xc6   : > { %v758_v28 = vpop.f32.mrf.mxu0  ;;  %v960_v12 = vadd.f32 %v959_v5, %v827_v9  ;;  %v1973_v5 = vld [vmem:[%s622_s17] sm:$0xff]   ;;  %s631_s17 = scalar_lea.vmem %s2613_s15, %s2210_s16 }
  0xc7   : > { %v759_v30 = vadd.f32 %v758_v28, %v689_v27  ;;  %v832_v27 = vpop.permute.xlu2 %831  ;;  %v1673_v28 = vld [vmem:[%s2611_s13 + $0x10] sm:$0xff]  ;;  %v2473_v11 = vunpack.c.l.bf16 %v1973_v5 }
  0xc8   : > { %v1005_v16 = vpack.c.bf16 %v960_v12, %v960_v12 }
  0xc9   : > { %v997_v32 = vpack.c.bf16 %v759_v30, %v759_v30 }
  0xca   : > { %v1240_v20 = vunpack.c.l.b16 %v1005_v16 }
  0xcb   : > { %v1218_v36 = vunpack.c.l.b16 %v997_v32 }
  0xcc   : > { %v1241_v22 = vpack.c.b16 %v1240_v20, %v1239_v19 }
  0xcd   : > { %v1219_v38 = vpack.c.b16 %v1218_v36, %v1217_v35  ;;  %v962_v14 = vpop.f32.mrf.mxu1 }
  0xce   : > { %v761_v40 = vpop.f32.mrf.mxu0  ;;  %v963_v30 = vadd.f32 %v962_v14, %v832_v27  ;;  %v2475_v14 = vunpack.c.h.bf16 %v1973_v5 }
  0xcf   : > { %v762_v42 = vadd.f32 %v761_v40, %v694_v39  ;;  %1221 = vxpose.xlu2.c.b16.start.end [1/1] (short) (narrow) %v1219_v38, 16 }
  0xd0   : > { %v1006_v34 = vpack.c.bf16 %v963_v30, %v963_v30 }
  0xd1   : > { %v998_v43 = vpack.c.bf16 %v762_v42, %v762_v42  ;;  %v2458_v42 = vunpack.c.l.bf16 %v1969_v41 }
  0xd2   : > { %v1334_v36 = vunpack.c.l.b16 %v1006_v34 }
  0xd3   : > { %v1312_v45 = vunpack.c.l.b16 %v998_v43  ;;  %v1019_v43 = vstv %s1016_s24 }
  0xd5   : > { %v1314_v47 = vpack.c.b16 %v1313_v44, %v1312_v45  ;;  %v965_v24 = vpop.f32.mrf.mxu1  ;;  %v1020_v44 = vmul.f32 %v2458_v42, %v1019_v43 }
  0xd6   : > { %v966_v29 = vadd.f32 %v965_v24, %v837_v26 }
  0xd7   : > { %1316 = vxpose.xlu0.c.b16.start.end [1/1] (short) (narrow) %v1314_v47, 16  ;;  %v2461_v47 = vunpack.c.h.bf16 %v1969_v41 }
  0xd8   : > { %v1007_v32 = vpack.c.bf16 %v966_v29, %v966_v29 }
  0xd9   : > { %v1021_v50 = vmul.f32 %v2461_v47, %v1019_v43 }
  0xda   : > { %v1335_v35 = vunpack.c.l.b16 %v1007_v32 }
  0xdc   : > { %v1336_v38 = vpack.c.b16 %v1335_v35, %v1334_v36 }
 0x119   : > { %841 = vperm.xlu1 %2021, %v791_v51   ;;  %v968_v51 = vpop.f32.mrf.mxu1 }
 0x121   : > { %856 = vperm.xlu1 %2021, %v794_v52  }
 0x129   : > { %861 = vperm.xlu1 %2021, %v795_v53  }
 0x131   : > { %866 = vperm.xlu1 %2021, %v796_v54  }
 0x138   : > { %846 = vperm.xlu2 %2022, %v792_v55  }
 0x139   : > { %871 = vperm.xlu1 %2021, %v797_v56   ;;  %v1117_v56 = vstv %s1932_s26 }
 0x140   : > { %876 = vperm.xlu2 %2022, %v798_v57  }
 0x141   : > { %1592 = vperm.xlu1 %2021, %v1554_v58  }
 0x145   : > { %851 = vperm.xlu0 %2020, %v793_v59   ;;  %v1118_v59 = vmul.f32 %v2458_v42, %v1117_v56 }
 0x148   : > { %1587 = vperm.xlu2 %2022, %v1553_v60  }
 0x149   : > { %1582 = vperm.xlu1 %2021, %v1552_v61  }
 0x14d   : > { %1648 = vperm.xlu0 %2020, %v1610_v62   ;;  %v971_v62 = vpop.f32.mrf.mxu1 }
 0x150   : > { %1643 = vperm.xlu2 %2022, %v1609_v63  }
 0x151   : > { %1638 = vperm.xlu1 %2021, %v1608_v1  }
 0x155   : > { %1577 = vperm.xlu0 %2020, %v1551_v2  }
 0x158   : > { %1572 = vperm.xlu2 %2022, %v1550_v3  }
 0x159   : > { %1567 = vperm.xlu1 %2021, %v1549_v4   ;;  %v1119_v4 = vmul.f32 %v2461_v47, %v1117_v56  ;;  %v1307_v56 = vstv %s2482_s18 }
 0x15d   : > { %1633 = vperm.xlu0 %2020, %v1607_v6  }
 0x160   : > { %1628 = vperm.xlu2 %2022, %v1606_v8  }
 0x161   : > { %1623 = vperm.xlu1 %2021, %v1605_v10  }
 0x165   : > { %1562 = vperm.xlu0 %2020, %v1548_v13  }
 0x168   : > { %1557 = vperm.xlu2 %2022, %v1547_v17   ;;  %v1212_v17 = vstv %s2465_s29 }
 0x169   : > { %1613 = vperm.xlu1 %2021, %v1603_v18   ;;  %v974_v18 = vpop.f32.mrf.mxu1  ;;  %v1213_v24 = vmul.f32 %v2458_v42, %v1212_v17  ;;  %v1214_v43 = vmul.f32 %v2461_v47, %v1212_v17 }
 0x16b   : > { %v2024_v23 = vpop.trf.xlu1 }
 0x16c   : > { %1930 = vmatmul.msk.bf16.vlgmr.msra.gmra.mxu2 %vm1050_vm1, %v2024_v23 }
 0x16d   : > { %1618 = vperm.xlu0 %2020, %v1604_v21   ;;  %1253 = vmatpush.bf16.msra.mxu2 %v1241_v22 }
 0x170   : > { %1677 = vperm.xlu2 %2022, %v1671_v25   ;;  %v1229_v39 = vpop.trf.xlu2 }
 0x171   : > { %1687 = vperm.xlu1 %2021, %v1673_v28  }
 0x173   : > { %v2025_v37 = vpop.trf.xlu1 }
 0x175   : > { %1682 = vperm.xlu0 %2020, %v1672_v31  }
 0x178   : > { %1692 = vperm.xlu2 %2022, %v1674_v33  }
 0x17c   : > { %1933 = vmatmul.msk.bf16.vlgmr.msrb.gmra.mxu2 %vm1050_vm1, %v2025_v37 }
 0x17d   : > { %1348 = vmatpush.bf16.msrb.mxu2 %v1336_v38 }
 0x183   : > { %v1324_v40 = vpop.trf.xlu0 }
 0x18b   : > { %v842_v19 = vpop.permute.xlu1 %841 }
 0x18c   : > { %1936 = vmatmul.msk.bf16.vlgmr.msra.gmra.mxu2 %vm1050_vm1, %v1229_v39  ;;  %v969_v25 = vadd.f32 %v968_v51, %v842_v19  ;;  %v977_v39 = vpop.f32.mrf.mxu1 }
 0x18e   : > { %v1008_v34 = vpack.c.bf16 %v969_v25, %v969_v25 }
 0x192   : > { %v847_v10 = vpop.permute.xlu2 %846 }
 0x193   : > { %v972_v21 = vadd.f32 %v971_v62, %v847_v10 }
 0x195   : > { %v1009_v29 = vpack.c.bf16 %v972_v21, %v972_v21 }
 0x197   : > { %v1090_v38 = vunpack.c.l.b16 %v1009_v29 }
 0x19c   : > { %1939 = vmatmul.msk.bf16.vlgmr.msrb.gmra.mxu2 %vm1050_vm1, %v1324_v40  ;;  %v857_v40 = vpop.permute.xlu1 %856 }
 0x19d   : > { %v978_v62 = vadd.f32 %v977_v39, %v857_v40 }
 0x1b7   : > { %v852_v51 = vpop.permute.xlu0 %851 }
 0x1ef   : > { %v1063_v45 = vpop.f32.mrf.mxu2 }
 0x1f0   : > { %v1064_v46 = vadd.f32 %v1063_v45, %v1020_v44  ;;  %v1089_v44 = vunpack.c.l.b16 %v1008_v34 }
 0x1f2   : > { %v1068_v48 = vmin.f32 %v1064_v46, 30.0 }
 0x1f4   : > { %v1070_v49 = vpack.c.bf16 %v1068_v48, %v1068_v48  ;;  %v1091_v48 = vpack.c.b16 %v1090_v38, %v1089_v44 }
 0x1f6   : > { %v1072_v52 = vunpack.c.l.bf16 %v1070_v49 }
 0x1f7   : > { %v1065_v53 = vpop.f32.mrf.mxu2 }
 0x1f8   : > { %v1074_v54 = vmul.f32 1.442695, %v1072_v52  ;;  %v1066_v55 = vadd.f32 %v1065_v53, %v1021_v50 }
 0x1fa   : > { %v1069_v57 = vmin.f32 %v1066_v55, 30.0  ;;  %2026 = vpow2.f32 %v1074_v54 }
 0x1fc   : > { %v1071_v58 = vpack.c.bf16 %v1069_v57, %v1069_v57 }
 0x1fe   : > { %v1073_v60 = vunpack.c.l.bf16 %v1071_v58  ;;  %v975_v58 = vadd.f32 %v974_v18, %v852_v51 }
 0x1ff   : > { %v1160_v61 = vpop.f32.mrf.mxu2 }
 0x200   : > { %v1076_v63 = vmul.f32 1.442695, %v1073_v60  ;;  %v1161_v0 = vadd.f32 %v1160_v61, %v1118_v59  ;;  %v2027_v1 = vpop.eup %2026  ;;  %v1308_v61 = vmul.f32 %v2458_v42, %v1307_v56 }
 0x201   : > { %v1078_v6 = vpack.c.bf16 %v2027_v1, %v2027_v1  ;;  %v980_v1 = vpop.f32.mrf.mxu1 }
 0x202   : > { %2028 = vpow2.f32 %v1076_v63  ;;  %v1165_v2 = vmin.f32 %v1161_v0, 30.0 }
 0x203   : > { %v1080_v15 = vunpack.c.l.bf16 %v1078_v6 }
 0x204   : > { %v1167_v3 = vpack.c.bf16 %v1165_v2, %v1165_v2  ;;  %v862_v2 = vpop.permute.xlu1 %861 }
 0x205   : > { %v1084_v26 = vmul.f32 %v2473_v11, %v1080_v15 }
 0x206   : > { %v1169_v7 = vunpack.c.l.bf16 %v1167_v3 }
 0x207   : > { %v1162_v8 = vpop.f32.mrf.mxu2 }
 0x208   : > { %v2029_v9 = vpop.eup %2028  ;;  %v1171_v12 = vmul.f32 1.442695, %v1169_v7  ;;  %v1163_v13 = vadd.f32 %v1162_v8, %v1119_v4  ;;  %v1010_v4 = vpack.c.bf16 %v975_v58, %v975_v58 }
 0x209   : > { %v1079_v16 = vpack.c.bf16 %v2029_v9, %v2029_v9  ;;  %v1011_v9 = vpack.c.bf16 %v978_v62, %v978_v62 }
 0x20a   : > { %v1166_v20 = vmin.f32 %v1163_v13, 30.0  ;;  %2030 = vpow2.f32 %v1171_v12  ;;  %v1184_v42 = vunpack.c.l.b16 %v1010_v4 }
 0x20b   : > { %v1081_v22 = vunpack.c.l.bf16 %v1079_v16  ;;  %v1309_v16 = vmul.f32 %v2461_v47, %v1307_v56  ;;  %v1185_v17 = vunpack.c.l.b16 %v1011_v9  ;;  %v981_v47 = vadd.f32 %v980_v1, %v862_v2 }
 0x20c   : > { %v1168_v23 = vpack.c.bf16 %v1166_v20, %v1166_v20 }
 0x20d   : > { %v1085_v27 = vmul.f32 %v2475_v14, %v1081_v22  ;;  %v1186_v20 = vpack.c.b16 %v1185_v17, %v1184_v42  ;;  %v1012_v39 = vpack.c.bf16 %v981_v47, %v981_v47  ;;  %v1406_v47 = vld [vmem:[%s2606_s8 + $0x28] sm:$0xff] }
 0x20e   : > { %v1170_v28 = vunpack.c.l.bf16 %v1168_v23  ;;  %v983_v23 = vpop.f32.mrf.mxu1 }
 0x20f   : > { %v1255_v30 = vpop.f32.mrf.mxu2  ;;  %v1086_v31 = vpack.c.bf16 %v1085_v27, %v1084_v26  ;;  %v1279_v44 = vunpack.c.l.b16 %v1012_v39  ;;  %v1415_v39 = vld [vmem:[%s2607_s9 + $0x30] sm:$0xff] }
 0x210   : > { %v1173_v32 = vmul.f32 1.442695, %v1170_v28  ;;  %v1256_v33 = vadd.f32 %v1255_v30, %v1213_v24  ;;  %v2031_v36 = vpop.eup %2030  ;;  %v867_v24 = vpop.permute.xlu1 %866 }
 0x211   : > { %v1096_v35 = vsel %vm1050_vm1, %v1086_v31, 0  ;;  %v1175_v45 = vpack.c.bf16 %v2031_v36, %v2031_v36  ;;  %v984_v30 = vadd.f32 %v983_v23, %v867_v24 }
 0x212   : > { %2032 = vpow2.f32 %v1173_v32  ;;  %v1260_v37 = vmin.f32 %v1256_v33, 30.0  ;;  %1105 = vmatpush.bf16.xpose.msra.mxu3 %v1096_v35 }
 0x213   : > { %v1177_v54 = vunpack.c.l.bf16 %v1175_v45  ;;  %v1013_v36 = vpack.c.bf16 %v984_v30, %v984_v30  ;;  %v1409_v30 = vld [vmem:[%s2607_s9] sm:$0xff] }
 0x214   : > { %v1262_v41 = vpack.c.bf16 %v1260_v37, %v1260_v37 }
 0x215   : > { %v1179_v63 = vmul.f32 %v2473_v11, %v1177_v54  ;;  %v877_v54 = vpop.permute.xlu2 %876 }
 0x216   : > { %v1264_v46 = vunpack.c.l.bf16 %v1262_v41 }
 0x217   : > { %v1257_v49 = vpop.f32.mrf.mxu2 }
 0x218   : > { %v2033_v50 = vpop.eup %2032  ;;  %v1266_v52 = vmul.f32 1.442695, %v1264_v46  ;;  %v1258_v53 = vadd.f32 %v1257_v49, %v1214_v43  ;;  %v1280_v43 = vunpack.c.l.b16 %v1013_v36  ;;  %v986_v49 = vpop.f32.mrf.mxu1  ;;  %v1408_v36 = vld [vmem:[%s2606_s8 + $0x38] sm:$0xff] }
 0x219   : > { %v1176_v55 = vpack.c.bf16 %v2033_v50, %v2033_v50  ;;  %1931 = vmatmul.msk.bf16.vlgmr.msra.gmra.mxu3 %vm1050_vm1, %v1091_v48  ;;  %v872_v50 = vpop.permute.xlu1 %871 }
 0x21a   : > { %v1261_v57 = vmin.f32 %v1258_v53, 30.0  ;;  %2034 = vpow2.f32 %v1266_v52  ;;  %v1281_v46 = vpack.c.b16 %v1280_v43, %v1279_v44  ;;  %v989_v53 = vpop.f32.mrf.mxu3 }
 0x21b   : > { %v1178_v59 = vunpack.c.l.bf16 %v1176_v55  ;;  %v987_v55 = vadd.f32 %v986_v49, %v872_v50 }
 0x21c   : > { %v1263_v60 = vpack.c.bf16 %v1261_v57, %v1261_v57  ;;  %v990_v57 = vadd.f32 %v989_v53, %v877_v54 }
 0x21d   : > { %v1180_v0 = vmul.f32 %v2475_v14, %v1178_v59  ;;  %v1588_v54 = vpop.permute.xlu2 %1587 }
 0x21e   : > { %v1265_v3 = vunpack.c.l.bf16 %v1263_v60  ;;  %v1014_v60 = vpack.c.bf16 %v987_v55, %v987_v55  ;;  %v1015_v62 = vpack.c.bf16 %v990_v57, %v990_v57  ;;  %v1649_v55 = vpop.permute.xlu0 %1648 }
 0x21f   : > { %v1350_v5 = vpop.f32.mrf.mxu2  ;;  %v1181_v6 = vpack.c.bf16 %v1180_v0, %v1179_v63 }
 0x220   : > { %v1268_v7 = vmul.f32 1.442695, %v1265_v3  ;;  %v1351_v8 = vadd.f32 %v1350_v5, %v1308_v61  ;;  %v2035_v12 = vpop.eup %2034  ;;  %v1374_v0 = vunpack.c.l.b16 %v1014_v60  ;;  %v1375_v1 = vunpack.c.l.b16 %v1015_v62 }
 0x221   : > { %v1191_v10 = vsel %vm1050_vm1, %v1181_v6, 0  ;;  %v1270_v18 = vpack.c.bf16 %v2035_v12, %v2035_v12 }
 0x222   : > { %2036 = vpow2.f32 %v1268_v7  ;;  %v1355_v13 = vmin.f32 %v1351_v8, 30.0  ;;  %1200 = vmatpush.bf16.xpose.msrb.mxu3 %v1191_v10  ;;  %v1376_v2 = vpack.c.b16 %v1375_v1, %v1374_v0  ;;  %v1402_v10 = vld [vmem:[%s2606_s8 + $0x8] sm:$0xff] }
 0x223   : > { %v1272_v27 = vunpack.c.l.bf16 %v1270_v18 }
 0x224   : > { %v1357_v15 = vpack.c.bf16 %v1355_v13, %v1355_v13 }
 0x225   : > { %v1274_v33 = vmul.f32 %v2473_v11, %v1272_v27 }
 0x226   : > { %v1359_v19 = vunpack.c.l.bf16 %v1357_v15  ;;  %v1578_v60 = vpop.permute.xlu0 %1577 }
 0x227   : > { %v1352_v21 = vpop.f32.mrf.mxu2 }
 0x228   : > { %v2037_v22 = vpop.eup %2036  ;;  %v1361_v25 = vmul.f32 1.442695, %v1359_v19  ;;  %v1353_v26 = vadd.f32 %v1352_v21, %v1309_v16  ;;  %v1403_v16 = vld [vmem:[%s2606_s8 + $0x10] sm:$0xff] }
 0x229   : > { %v1271_v28 = vpack.c.bf16 %v2037_v22, %v2037_v22  ;;  %1934 = vmatmul.msk.bf16.vlgmr.msrb.gmra.mxu3 %vm1050_vm1, %v1186_v20 }
 0x22a   : > { %v1356_v29 = vmin.f32 %v1353_v26, 30.0  ;;  %2038 = vpow2.f32 %v1361_v25  ;;  %v1404_v25 = vld [vmem:[%s2606_s8 + $0x18] sm:$0xff] }
 0x22b   : > { %v1273_v31 = vunpack.c.l.bf16 %v1271_v28 }
 0x22c   : > { %v1358_v32 = vpack.c.bf16 %v1356_v29, %v1356_v29 }
 0x22d   : > { %v1275_v34 = vmul.f32 %v2475_v14, %v1273_v31  ;;  %v1405_v31 = vld [vmem:[%s2606_s8 + $0x20] sm:$0xff] }
 0x22e   : > { %v1360_v35 = vunpack.c.l.bf16 %v1358_v32  ;;  %v1410_v32 = vld [vmem:[%s2607_s9 + $0x8] sm:$0xff] }
 0x22f   : > { %v1276_v37 = vpack.c.bf16 %v1275_v34, %v1274_v33  ;;  %v1411_v33 = vld [vmem:[%s2607_s9 + $0x10] sm:$0xff] }
 0x230   : > { %v1363_v38 = vmul.f32 1.442695, %v1360_v35  ;;  %v2039_v41 = vpop.eup %2038  ;;  %v1407_v34 = vld [vmem:[%s2606_s8 + $0x30] sm:$0xff]  ;;  %v1412_v35 = vld [vmem:[%s2607_s9 + $0x18] sm:$0xff] }
 0x231   : > { %v1286_v40 = vsel %vm1050_vm1, %v1276_v37, 0  ;;  %v1365_v45 = vpack.c.bf16 %v2039_v41, %v2039_v41  ;;  %v1413_v37 = vld [vmem:[%s2607_s9 + $0x20] sm:$0xff] }
 0x232   : > { %2040 = vpow2.f32 %v1363_v38  ;;  %1295 = vmatpush.bf16.xpose.msra.mxu3 %v1286_v40  ;;  %v1414_v38 = vld [vmem:[%s2607_s9 + $0x28] sm:$0xff]  ;;  %v1416_v40 = vld [vmem:[%s2607_s9 + $0x38] sm:$0xff] }
 0x233   : > { %v1367_v51 = vunpack.c.l.bf16 %v1365_v45 }
 0x235   : > { %v1369_v58 = vmul.f32 %v2473_v11, %v1367_v51  ;;  %v1401_v11 = vld [vmem:[%s2606_s8] sm:$0xff]  ;;  %v1593_v51 = vpop.permute.xlu1 %1592 }
 0x236   : > { %1949 = vmatmul.msk.f32.vlgmr.msrb.gmra.mxu0 %vm701_vm0, %v1401_v11 }
 0x238   : > { %v2041_v48 = vpop.eup %2040 }
 0x239   : > { %v1366_v52 = vpack.c.bf16 %v2041_v48, %v2041_v48  ;;  %1937 = vmatmul.msk.bf16.vlgmr.msra.gmra.mxu3 %vm1050_vm1, %v1281_v46 }
 0x23b   : > { %v1368_v56 = vunpack.c.l.bf16 %v1366_v52 }
 0x23d   : > { %v1370_v59 = vmul.f32 %v2475_v14, %v1368_v56  ;;  %v1583_v56 = vpop.permute.xlu1 %1582 }
 0x23e   : > { %1950 = vmatmul.msk.f32.gmra.mxu0 %vm701_vm0, %v1402_v10 }
 0x23f   : > { %v1371_v61 = vpack.c.bf16 %v1370_v59, %v1369_v58  ;;  %v1644_v59 = vpop.permute.xlu2 %1643 }
 0x241   : > { %v1381_v63 = vsel %vm1050_vm1, %v1371_v61, 0 }
 0x242   : > { %1390 = vmatpush.bf16.xpose.msrb.mxu3 %v1381_v63 }
 0x245   : > { %v1639_v62 = vpop.permute.xlu1 %1638 }
 0x246   : > { %1951 = vmatmul.msk.f32.gmra.mxu0 %vm701_vm0, %v1403_v16 }
 0x247   : > { %v1573_v0 = vpop.permute.xlu2 %1572 }
 0x249   : > { %1940 = vmatmul.msk.bf16.vlgmr.msrb.gmra.mxu3 %vm1050_vm1, %v1376_v2  ;;  %v1634_v2 = vpop.permute.xlu0 %1633 }
 0x24e   : > { %1952 = vmatmul.msk.f32.gmra.mxu0 %vm701_vm0, %v1404_v25 }
 0x256   : > { %1953 = vmatmul.msk.f32.gmra.mxu0 %vm701_vm0, %v1405_v31 }
 0x25e   : > { %1954 = vmatmul.msk.f32.gmra.mxu0 %vm701_vm0, %v1406_v47 }
 0x266   : > { %1955 = vmatmul.msk.f32.gmra.mxu0 %vm701_vm0, %v1407_v34 }
 0x26e   : > { %1956 = vmatmul.msk.f32.gmra.mxu0 %vm701_vm0, %v1408_v36 }
 0x29c   : > { %v1107_v3 = vpop.f32.mrf.mxu3 }
 0x2a4   : > { %v1109_v4 = vpop.f32.mrf.mxu3 }
 0x2a5   : > { %v1112_v42 = vadd.f32 1e-08, %v1109_v4 }
 0x2ac   : > { %v1202_v5 = vpop.f32.mrf.mxu3 }
 0x2b3   : > { %v1523_v41 = vpop.f32.mrf.mxu0 }
 0x2b4   : > { %v1204_v6 = vpop.f32.mrf.mxu3 }
 0x2b5   : > { %v1207_v12 = vadd.f32 1e-08, %v1204_v6 }
 0x2bb   : > { %v1526_v43 = vpop.f32.mrf.mxu0 }
 0x2bc   : > { %v1297_v7 = vpop.f32.mrf.mxu3 }
 0x2c3   : > { %v1529_v46 = vpop.f32.mrf.mxu0 }
 0x2c4   : > { %v1299_v8 = vpop.f32.mrf.mxu3 }
 0x2c5   : > { %v1302_v9 = vadd.f32 1e-08, %v1299_v8 }
 0x2c7   : > { %2042 = vrcp.f32 %v1302_v9  ;;  %v1629_v9 = vpop.permute.xlu2 %1628 }
 0x2c8   : > { %2044 = vrcp.f32 %v1207_v12 }
 0x2cb   : > { %v1532_v49 = vpop.f32.mrf.mxu0 }
 0x2cc   : > { %v1392_v14 = vpop.f32.mrf.mxu3 }
 0x2cd   : > { %v2043_v17 = vpop.eup %2042 }
 0x2ce   : > { %v2045_v18 = vpop.eup %2044  ;;  %v1304_v20 = vperm.slane %v2043_v17, 0 }
 0x2cf   : > { %v1209_v23 = vperm.slane %v2045_v18, 0 }
 0x2d0   : > { %v1305_v27 = vmul.f32 %v1304_v20, %v1297_v7 }
 0x2d1   : > { %v1210_v28 = vmul.f32 %v1209_v23, %v1202_v5 }
 0x2d3   : > { %v1535_v53 = vpop.f32.mrf.mxu0 }
 0x2d4   : > { %v1394_v13 = vpop.f32.mrf.mxu3 }
 0x2d5   : > { %v1397_v15 = vadd.f32 1e-08, %v1394_v13 }
 0x2d7   : > { %2046 = vrcp.f32 %v1397_v15 }
 0x2d8   : > { %2048 = vrcp.f32 %v1112_v42  ;;  %v1563_v42 = vpop.permute.xlu0 %1562 }
 0x2db   : > { %v1538_v58 = vpop.f32.mrf.mxu0 }
 0x2dd   : > { %v2047_v19 = vpop.eup %2046 }
 0x2de   : > { %v1399_v21 = vperm.slane %v2047_v19, 0  ;;  %v2049_v22 = vpop.eup %2048 }
 0x2df   : > { %v1114_v26 = vperm.slane %v2049_v22, 0 }
 0x2e0   : > { %v1400_v24 = vmul.f32 %v1399_v21, %v1392_v14 }
 0x2e1   : > { %v1115_v29 = vmul.f32 %v1114_v26, %v1107_v3  ;;  %v1568_v3 = vpop.permute.xlu1 %1567 }
 0x2e2   : > { %1453 = vmatpush.msra.mxu2 %v1400_v24 }
 0x2e3   : > { %v1541_v63 = vpop.f32.mrf.mxu0 }
 0x2e4   : > { %1454 = vmatpush.msra.mxu2 %v1305_v27 }
 0x2e6   : > { %1455 = vmatpush.msra.mxu2 %v1210_v28 }
 0x2e8   : > { %1456 = vmatpush.msra.mxu2 %v1115_v29 }
 0x2e9   : > { %1941 = vmatmul.msk.f32.vlgmr.msra.gmra.mxu2 %vm701_vm0, %v1409_v30  ;;  %v1624_v19 = vpop.permute.xlu1 %1623  ;;  %v1558_v30 = vpop.permute.xlu2 %1557 }
 0x2eb   : > { %v1544_v5 = vpop.f32.mrf.mxu0 }
 0x2f1   : > { %1942 = vmatmul.msk.f32.gmra.mxu2 %vm701_vm0, %v1410_v32  ;;  %v1614_v36 = vpop.permute.xlu1 %1613 }
 0x2f9   : > { %1943 = vmatmul.msk.f32.gmra.mxu2 %vm701_vm0, %v1411_v33  ;;  %v1619_v33 = vpop.permute.xlu0 %1618 }
 0x301   : > { %1944 = vmatmul.msk.f32.gmra.mxu2 %vm701_vm0, %v1412_v35 }
 0x309   : > { %1945 = vmatmul.msk.f32.gmra.mxu2 %vm701_vm0, %v1413_v37 }
 0x311   : > { %1946 = vmatmul.msk.f32.gmra.mxu2 %vm701_vm0, %v1414_v38 }
 0x319   : > { %1947 = vmatmul.msk.f32.gmra.mxu2 %vm701_vm0, %v1415_v39 }
 0x321   : > { %1948 = vmatmul.msk.f32.gmra.mxu2 %vm701_vm0, %v1416_v40 }
 0x36c   : > { %v1458_v44 = vpop.f32.mrf.mxu2 }
 0x36d   : > { %v1524_v45 = vadd.f32 %v1523_v41, %v1458_v44  ;;  %v1667_v41 = vld [vmem:[%s2610_s12] sm:$0xff]  ;;  %v1669_v44 = vld [vmem:[%s2610_s12 + $0x10] sm:$0xff] }
 0x36f   : > { %v1595_v31 = vmul.f32 %v1558_v30, %v1524_v45  ;;  %v1670_v45 = vld [vmem:[%s2610_s12 + $0x18] sm:$0xff] }
 0x371   : > { %v1651_v38 = vadd.f32 %v1614_v36, %v1595_v31 }
 0x373   : > { %v1659_v40 = vmax.f32 %v1651_v38, 0.0 }
 0x374   : > { %v1461_v48 = vpop.f32.mrf.mxu2 }
 0x375   : > { %v1527_v20 = vadd.f32 %v1526_v43, %v1461_v48  ;;  %v1668_v43 = vld [vmem:[%s2610_s12 + $0x8] sm:$0xff] }
 0x377   : > { %v1596_v27 = vmul.f32 %v1563_v42, %v1527_v20 }
 0x379   : > { %v1652_v35 = vadd.f32 %v1619_v33, %v1596_v27 }
 0x37b   : > { %v1660_v39 = vmax.f32 %v1652_v35, 0.0 }
 0x37c   : > { %v1464_v50 = vpop.f32.mrf.mxu2 }
 0x37d   : > { %v1530_v15 = vadd.f32 %v1529_v46, %v1464_v50  ;;  %v1678_v46 = vpop.permute.xlu2 %1677  ;;  %v2050_v50 = vld [vmem:[%s2216_s23] sm:$0xff] }
 0x37f   : > { %v1597_v24 = vmul.f32 %v1568_v3, %v1530_v15 }
 0x381   : > { %v1653_v47 = vadd.f32 %v1624_v19, %v1597_v24 }
 0x383   : > { %v1661_v37 = vmax.f32 %v1653_v47, 0.0 }
 0x384   : > { %v1467_v52 = vpop.f32.mrf.mxu2 }
 0x385   : > { %v1533_v10 = vadd.f32 %v1532_v49, %v1467_v52  ;;  %v1683_v52 = vpop.permute.xlu0 %1682 }
 0x387   : > { %v1598_v21 = vmul.f32 %v1573_v0, %v1533_v10 }
 0x389   : > { %v1654_v29 = vadd.f32 %v1629_v9, %v1598_v21 }
 0x38b   : > { %v1662_v34 = vmax.f32 %v1654_v29, 0.0 }
 0x38c   : > { %v1470_v57 = vpop.f32.mrf.mxu2 }
 0x38d   : > { %v1536_v8 = vadd.f32 %v1535_v53, %v1470_v57  ;;  %v1688_v57 = vpop.permute.xlu1 %1687 }
 0x38f   : > { %v1599_v16 = vmul.f32 %v1578_v60, %v1536_v8  ;;  %v2052_v60 = vld [vmem:[%s2216_s23 + $0x10] sm:$0xff] }
 0x391   : > { %v1655_v26 = vadd.f32 %v1634_v2, %v1599_v16 }
 0x393   : > { %v1663_v32 = vmax.f32 %v1655_v26, 0.0 }
 0x394   : > { %v1473_v61 = vpop.f32.mrf.mxu2 }
 0x395   : > { %v1539_v6 = vadd.f32 %v1538_v58, %v1473_v61 }
 0x397   : > { %v1600_v12 = vmul.f32 %v1583_v56, %v1539_v6 }
 0x399   : > { %v1656_v23 = vadd.f32 %v1639_v62, %v1600_v12  ;;  %v1693_v62 = vpop.permute.xlu2 %1692 }
 0x39b   : > { %v1664_v28 = vmax.f32 %v1656_v23, 0.0 }
 0x39c   : > { %v1476_v1 = vpop.f32.mrf.mxu2 }
 0x39d   : > { %v1542_v4 = vadd.f32 %v1541_v63, %v1476_v1  ;;  %v2053_v1 = vld [vmem:[%s2216_s23 + $0x18] sm:$0xff] }
 0x39f   : > { %v1601_v11 = vmul.f32 %v1588_v54, %v1542_v4 }
 0x3a1   : > { %v1657_v18 = vadd.f32 %v1644_v59, %v1601_v11 }
 0x3a3   : > { %v1665_v25 = vmax.f32 %v1657_v18, 0.0 }
 0x3a4   : > { %v1479_v7 = vpop.f32.mrf.mxu2 }
 0x3a5   : > { %v1545_v14 = vadd.f32 %v1544_v5, %v1479_v7 }
 0x3a7   : > { %v1602_v13 = vmul.f32 %v1593_v51, %v1545_v14 }
 0x3a9   : > { %v1658_v17 = vadd.f32 %v1649_v55, %v1602_v13  ;;  %v2051_v55 = vld [vmem:[%s2216_s23 + $0x8] sm:$0xff] }
 0x3ab   : > { %v1666_v22 = vmax.f32 %v1658_v17, 0.0 }
 0x3ad   : > { %1716 = vmatpush.msra.mxu3 %v1666_v22 }
 0x3af   : > { %1717 = vmatpush.msra.mxu3 %v1665_v25 }
 0x3b1   : > { %1718 = vmatpush.msra.mxu3 %v1664_v28 }
 0x3b3   : > { %1719 = vmatpush.msra.mxu3 %v1663_v32 }
 0x3b5   : > { %1720 = vmatpush.msra.mxu3 %v1662_v34 }
 0x3b7   : > { %1721 = vmatpush.msra.mxu3 %v1661_v37 }
 0x3b9   : > { %1722 = vmatpush.msra.mxu3 %v1660_v39 }
 0x3bb   : > { %1723 = vmatpush.msra.mxu3 %v1659_v40 }
 0x3bc   : > { %1957 = vmatmul.msk.f32.vlgmr.msra.gmra.mxu3 %vm1695_vm2, %v1667_v41 }
 0x3c4   : > { %1958 = vmatmul.msk.f32.gmra.mxu3 %vm1695_vm2, %v1668_v43 }
 0x3cc   : > { %1959 = vmatmul.msk.f32.gmra.mxu3 %vm1695_vm2, %v1669_v44 }
 0x3d4   : > { %1960 = vmatmul.msk.f32.gmra.mxu3 %vm1695_vm2, %v1670_v45 }
 0x43f   : > { %v1725_v48 = vpop.f32.mrf.mxu3 }
 0x440   : > { %v1726_v49 = vadd.f32 %v1725_v48, %v1678_v46 }
 0x442   : > { %v1737_v51 = vadd.f32 %v2050_v50, %v1726_v49 }
 0x444   : > { %1741 = vst.msk [vmem:[%s631_s17] sm:$0xff] %vm1050_vm1, %v1737_v51 }
 0x447   : > { %v1728_v53 = vpop.f32.mrf.mxu3 }
 0x448   : > { %v1729_v54 = vadd.f32 %v1728_v53, %v1683_v52 }
 0x44a   : > { %v1738_v56 = vadd.f32 %v2051_v55, %v1729_v54 }
 0x44c   : > { %1742 = vst.msk [vmem:[%s631_s17 + $0x8] sm:$0xff] %vm1050_vm1, %v1738_v56 }
 0x44f   : > { %v1731_v58 = vpop.f32.mrf.mxu3 }
 0x450   : > { %v1732_v59 = vadd.f32 %v1731_v58, %v1688_v57 }
 0x452   : > { %v1739_v61 = vadd.f32 %v2052_v60, %v1732_v59 }
 0x454   : > { %1743 = vst.msk [vmem:[%s631_s17 + $0x10] sm:$0xff] %vm1050_vm1, %v1739_v61 }
 0x457   : > { %v1734_v63 = vpop.f32.mrf.mxu3 }
 0x458   : > { %v1735_v0 = vadd.f32 %v1734_v63, %v1693_v62 }
 0x45a   : > { %v1740_v2 = vadd.f32 %v2053_v1, %v1735_v0 }
 0x45c   : > { %1744 = vst.msk [vmem:[%s631_s17 + $0x18] sm:$0xff] %vm1050_vm1, %v1740_v2 }
 0x45d PF: > { %s26_s20 = sadd.s32 1, %s2095_s20   ;;  %s2616_s18 = smov %s2091_s19 }
 0x45e   : > { %p23_p8 = scmp.ge.s32.totalorder %s26_s20, 4   ;;  %s2617_s19 = smov %s2619_s22 }
 0x460   :  { %25 = sbr.rel (!%p23_p8) target bundleno = 4 (0x4), region = 124 }
 0x465   :  { %1772 = vsyncpa [#allocation3], 1 }
 0x466   :  { %1774 = vsyncpa [#allocation3 + $0x1], 1 }

</bundles_post_ra>
